<compile_context>
chip_gen: v7x
topology: tpu7x:2x2x1
jax: 0.10.0
libtpu: 0.0.40
codegen_flags: <defaults>
</compile_context>

<pallas_src>
import jax
import jax.numpy as jnp
from jax.experimental import pallas as pl
from jax.experimental.pallas import tpu as pltpu


def attention_kernel(x1_ref, x2_ref,
                     wun_ref, bun_ref,
                     wvu_ref, bvu_ref,
                     ww_ref, bw_ref,
                     wc_ref, bc_ref,
                     yprob_ref, logits_ref, di_ref,
                     m_sc, l_sc, acc_sc):
    t = pl.program_id(1)
    n_t = pl.num_programs(1)

    @pl.when(t == 0)
    def _():
        m_sc[...] = jnp.full_like(m_sc, -jnp.inf)
        l_sc[...] = jnp.zeros_like(l_sc)
        acc_sc[...] = jnp.zeros_like(acc_sc)

    x1 = x1_ref[0]            # (Cin_pad, TN)   -- N on the lane axis
    x2 = x2_ref[0]            # (Cin_pad, TN)
    wun = wun_ref[...]        # (F, Cin_pad)
    bun = bun_ref[...]        # (F, 1)

    # TODO(synk): UNet stand-in = pointwise (1x1) conv + ReLU.
    h1 = jnp.maximum(jnp.dot(wun, x1, preferred_element_type=jnp.float32) + bun, 0.0)
    h2 = jnp.maximum(jnp.dot(wun, x2, preferred_element_type=jnp.float32) + bun, 0.0)
    di = jnp.abs(h1 - h2)                                   # (F, TN)  == DI / H tile
    di_ref[0] = di.astype(di_ref.dtype)                     # lane-dense store (NCHW-flat)

    # Fused gated attention (Ilse et al.): one (2D, F) @ (F, TN) matmul,
    # then split into tanh(V h) and sigmoid(U h).
    vu = jnp.dot(wvu_ref[...], di, preferred_element_type=jnp.float32) + bvu_ref[...]
    d_att = ww_ref.shape[0]
    av = jnp.tanh(vu[:d_att])                               # (D, TN)
    au = jax.nn.sigmoid(vu[d_att:])                         # (D, TN)
    gated = av * au                                         # (D, TN)

    # logits = w^T gated + b  -- VPU broadcast-multiply + sublane reduce
    # (avoids a width-1 MXU matmul and any (N,1)->(1,N) relayout).
    logits = jnp.sum(gated * ww_ref[...], axis=0, keepdims=True) + bw_ref[...]   # (1, TN)
    logits_ref[0] = logits                                  # raw logits; softmax in wrapper

    # Online softmax accumulation of the attention-weighted pooled feature.
    m_prev = m_sc[...]                                      # (1, 1)
    m_new = jnp.maximum(m_prev, jnp.max(logits, axis=-1, keepdims=True))
    alpha = jnp.exp(m_prev - m_new)                         # (1, 1)
    p = jnp.exp(logits - m_new)                             # (1, TN)
    l_sc[...] = alpha * l_sc[...] + jnp.sum(p, axis=-1, keepdims=True)
    acc_sc[...] = alpha * acc_sc[...] + jnp.sum(di * p, axis=-1, keepdims=True)   # (F, 1)
    m_sc[...] = m_new

    @pl.when(t == n_t - 1)
    def _():
        inv_l = pl.reciprocal(l_sc[...], approx=True)       # EUP slot, ~free
        m_feat = acc_sc[...] * inv_l                        # (F, 1)  == M^T
        logit_y = jnp.sum(wc_ref[...] * m_feat, axis=0, keepdims=True) + bc_ref[...]
        yprob_ref[0] = jax.nn.sigmoid(logit_y)              # (1, 1)


def attention_forward(x1_nchw, x2_nchw, params, tile_n=None):
    """Forward pass matching PyTorch `Attention.forward` semantics.

    Returns (Y_prob, Y_hat, A, DI) with A = softmax over instances and
    DI in NCHW layout (B, F, H, W).
    """
    wun_t, bun, w_vu, b_vu, ww, bw, wc, bc = params
    B, Cin, H, W = x1_nchw.shape
    N = H * W
    F = wun_t.shape[0]
    D = ww.shape[0]
    Cin_pad = wun_t.shape[1]

    if tile_n is None:
        # v7x-safe default; raise (e.g. 8192) on v5e/v6e with vmem_limit_bytes.
        tile_n = min(N, 2048)
    assert N % tile_n == 0, "instance count must be divisible by the N tile"
    n_tiles = N // tile_n

    def to_cn(x):
        # NCHW -> (B, Cin_pad, N): channel-first flat, N on the lane axis.
        xf = x.reshape(B, Cin, N).astype(jnp.float32)
        return jnp.pad(xf, ((0, 0), (0, Cin_pad - Cin), (0, 0)))

    x1f = to_cn(x1_nchw)
    x2f = to_cn(x2_nchw)

    def full(shape):
        return pl.BlockSpec(shape, lambda b, t, _s=shape: (0,) * len(_s))

    y_prob, logits, di_fn = pl.pallas_call(
        attention_kernel,
        out_shape=(
            jax.ShapeDtypeStruct((B, 1, 1), jnp.float32),    # Y_prob
            jax.ShapeDtypeStruct((B, 1, N), jnp.float32),    # raw attention logits
            jax.ShapeDtypeStruct((B, F, N), jnp.float32),    # DI (NCHW-flat)
        ),
        grid_spec=pltpu.PrefetchScalarGridSpec(
            num_scalar_prefetch=0,
            grid=(B, n_tiles),
            in_specs=[
                pl.BlockSpec((1, Cin_pad, tile_n), lambda b, t: (b, 0, t)),
                pl.BlockSpec((1, Cin_pad, tile_n), lambda b, t: (b, 0, t)),
                full((F, Cin_pad)), full((F, 1)),
                full((2 * D, F)), full((2 * D, 1)),
                full((D, 1)), full((1, 1)),
                full((F, 1)), full((1, 1)),
            ],
            out_specs=(
                pl.BlockSpec((1, 1, 1), lambda b, t: (b, 0, 0)),        # resident over N tiles
                pl.BlockSpec((1, 1, tile_n), lambda b, t: (b, 0, t)),
                pl.BlockSpec((1, F, tile_n), lambda b, t: (b, 0, t)),
            ),
            scratch_shapes=[
                pltpu.VMEM((1, 1), jnp.float32),   # running max m
                pltpu.VMEM((1, 1), jnp.float32),   # running sum l
                pltpu.VMEM((F, 1), jnp.float32),   # pooled-feature accumulator
            ],
        ),
        compiler_params=pltpu.CompilerParams(
            dimension_semantics=("parallel", "arbitrary")),
    )(x1f, x2f, wun_t, bun, w_vu, b_vu, ww, bw, wc, bc)

    a = jax.nn.softmax(logits, axis=-1)                      # exact softmax over instances
    y_hat = (y_prob >= 0.5).astype(jnp.float32)
    di_nchw = di_fn.reshape(B, F, H, W)                      # already NCHW-flat; no transpose
    return y_prob, y_hat, a, di_nchw


def reference_forward(x1, x2, params):
    """Pure-JAX reference with identical semantics (for a sanity check)."""
    wun_t, bun, w_vu, b_vu, ww, bw, wc, bc = params
    B, Cin, H, W = x1.shape
    N = H * W
    F = wun_t.shape[0]
    D = ww.shape[0]
    Cin_pad = wun_t.shape[1]

    def feats(x):
        xf = jnp.transpose(x, (0, 2, 3, 1)).reshape(B, N, Cin).astype(jnp.float32)
        xf = jnp.pad(xf, ((0, 0), (0, 0), (0, Cin_pad - Cin)))
        return jnp.maximum(xf @ wun_t.T + bun[:, 0], 0.0)     # (B, N, F)

    h = jnp.abs(feats(x1) - feats(x2))                        # (B, N, F)
    wv, wu = w_vu[:D], w_vu[D:]
    bv, bu = b_vu[:D, 0], b_vu[D:, 0]
    av = jnp.tanh(h @ wv.T + bv)
    au = jax.nn.sigmoid(h @ wu.T + bu)
    logits = (av * au) @ ww + bw                              # (B, N, 1)
    a = jax.nn.softmax(jnp.transpose(logits, (0, 2, 1)), axis=2)   # (B, 1, N)
    m = jnp.einsum("bin,bnf->bif", a, h)                      # (B, 1, F)
    y_prob = jax.nn.sigmoid(m @ wc + bc)                      # (B, 1, 1)
    di_nchw = jnp.transpose(h.reshape(B, H, W, F), (0, 3, 1, 2))
    return y_prob, a, di_nchw


if __name__ == "__main__":
    # Small shapes consistent with the module structure (real model uses im_dim=256).
    im_dim = 16
    im_channel = 3
    feature_channels = 64        # F
    attention_channels = 128     # D
    B = 2
    Cin_pad = 8
    TILE_N = 128                 # N=256 -> 2 tiles, exercises the online-softmax path

    key = jax.random.PRNGKey(0)
    keys = jax.random.split(key, 10)

    def uinit(k, shape, fan_in):
        bound = 1.0 / jnp.sqrt(jnp.float32(fan_in))
        return jax.random.uniform(k, shape, jnp.float32, -bound, bound)

    F = feature_channels
    D = attention_channels

    # Parameters in kernel (N-on-lanes) layout.
    wun_t = jnp.zeros((F, Cin_pad), jnp.float32).at[:, :im_channel].set(
        uinit(keys[2], (F, im_channel), im_channel))          # 1x1-conv stand-in for UNet
    bun = uinit(keys[3], (F, 1), im_channel)
    w_vu = uinit(keys[4], (2 * D, F), F)                      # fused [V; U] weight
    b_vu = uinit(keys[5], (2 * D, 1), F)
    ww = uinit(keys[6], (D, 1), D)
    bw = uinit(keys[7], (1, 1), D)
    wc = uinit(keys[8], (F, 1), F)
    bc = uinit(keys[9], (1, 1), F)
    params = (wun_t, bun, w_vu, b_vu, ww, bw, wc, bc)

    x1 = jax.random.normal(keys[0], (B, im_channel, im_dim, im_dim), jnp.float32)
    x2 = jax.random.normal(keys[1], (B, im_channel, im_dim, im_dim), jnp.float32)

    y_prob, y_hat, a, di = attention_forward(x1, x2, params, tile_n=TILE_N)
    jax.block_until_ready((y_prob, y_hat, a, di))

    # Sanity check against pure-JAX reference.
    y_ref, a_ref_out, di_ref_out = reference_forward(x1, x2, params)
    assert jnp.allclose(y_prob, y_ref, atol=1e-3, rtol=1e-3), "Y_prob mismatch"
    assert jnp.allclose(a, a_ref_out, atol=1e-3, rtol=1e-3), "A mismatch"
    assert jnp.allclose(di, di_ref_out, atol=1e-2, rtol=1e-2), "DI mismatch"
    assert y_prob.shape == (B, 1, 1) and y_hat.shape == (B, 1, 1)
    assert a.shape == (B, 1, im_dim * im_dim)
    assert di.shape == (B, feature_channels, im_dim, im_dim)

    print("KERNEL_OK")
</pallas_src>

<mosaic_0001>
module attributes {stable_mosaic.version = 11 : i64} {
  func.func @attention_kernel(%arg0: i32, %arg1: i32, %arg2: memref<1x8x128xf32, #tpu.memory_space<vmem>>, %arg3: memref<1x8x128xf32, #tpu.memory_space<vmem>>, %arg4: memref<64x8xf32, #tpu.memory_space<vmem>>, %arg5: memref<64x1xf32, #tpu.memory_space<vmem>>, %arg6: memref<256x64xf32, #tpu.memory_space<vmem>>, %arg7: memref<256x1xf32, #tpu.memory_space<vmem>>, %arg8: memref<128x1xf32, #tpu.memory_space<vmem>>, %arg9: memref<1x1xf32, #tpu.memory_space<vmem>>, %arg10: memref<64x1xf32, #tpu.memory_space<vmem>>, %arg11: memref<1x1xf32, #tpu.memory_space<vmem>>, %arg12: memref<1x1x1xf32, #tpu.memory_space<vmem>>, %arg13: memref<1x1x128xf32, #tpu.memory_space<vmem>>, %arg14: memref<1x64x128xf32, #tpu.memory_space<vmem>>, %arg15: memref<1x1xf32, #tpu.memory_space<vmem>>, %arg16: memref<1x1xf32, #tpu.memory_space<vmem>>, %arg17: memref<64x1xf32, #tpu.memory_space<vmem>>) attributes {dimension_semantics = [#tpu.dimension_semantics<parallel>, #tpu.dimension_semantics<arbitrary>], iteration_bounds = array<i64: 2, 2>, scalar_prefetch = 0 : i64, scratch_operands = 3 : i64, tpu.core_type = #tpu.core_type<tc>, window_params = [{transform_indices = @transform_0, window_bounds = array<i64: 1, 8, 128>}, {transform_indices = @transform_1, window_bounds = array<i64: 1, 8, 128>}, {pipeline_mode = #tpu.pipeline_mode<synchronous>, transform_indices = @transform_2, window_bounds = array<i64: 64, 8>}, {pipeline_mode = #tpu.pipeline_mode<synchronous>, transform_indices = @transform_3, window_bounds = array<i64: 64, 1>}, {pipeline_mode = #tpu.pipeline_mode<synchronous>, transform_indices = @transform_4, window_bounds = array<i64: 256, 64>}, {pipeline_mode = #tpu.pipeline_mode<synchronous>, transform_indices = @transform_5, window_bounds = array<i64: 256, 1>}, {pipeline_mode = #tpu.pipeline_mode<synchronous>, transform_indices = @transform_6, window_bounds = array<i64: 128, 1>}, {pipeline_mode = #tpu.pipeline_mode<synchronous>, transform_indices = @transform_7, window_bounds = array<i64: 1, 1>}, {pipeline_mode = #tpu.pipeline_mode<synchronous>, transform_indices = @transform_8, window_bounds = array<i64: 64, 1>}, {pipeline_mode = #tpu.pipeline_mode<synchronous>, transform_indices = @transform_9, window_bounds = array<i64: 1, 1>}, {transform_indices = @transform_10, window_bounds = array<i64: 1, 1, 1>}, {transform_indices = @transform_11, window_bounds = array<i64: 1, 1, 128>}, {transform_indices = @transform_12, window_bounds = array<i64: 1, 64, 128>}]} {
    %c0_i32 = arith.constant 0 : i32
    %0 = arith.cmpi eq, %arg1, %c0_i32 : i32
    %1 = arith.extui %0 : i1 to i32
    %c0_i32_0 = arith.constant 0 : i32
    %2 = arith.cmpi ne, %1, %c0_i32_0 : i32
    scf.if %2 {
      %cst_46 = arith.constant 0xFF800000 : f32
      %77 = vector.broadcast %cst_46 : f32 to vector<1x1xf32>
      %c0_47 = arith.constant 0 : index
      %c0_48 = arith.constant 0 : index
      %78 = vector.load %arg15[%c0_47, %c0_48] : memref<1x1xf32, #tpu.memory_space<vmem>>, vector<1x1xf32>
      tpu.vector_store %arg15[%c0_47, %c0_48], %77 {strides = array<i32>} : memref<1x1xf32, #tpu.memory_space<vmem>>, vector<1x1xf32>,
      %cst_49 = arith.constant 0.000000e+00 : f32
      %79 = vector.broadcast %cst_49 : f32 to vector<1x1xf32>
      %c0_50 = arith.constant 0 : index
      %c0_51 = arith.constant 0 : index
      %80 = vector.load %arg16[%c0_50, %c0_51] : memref<1x1xf32, #tpu.memory_space<vmem>>, vector<1x1xf32>
      tpu.vector_store %arg16[%c0_50, %c0_51], %79 {strides = array<i32>} : memref<1x1xf32, #tpu.memory_space<vmem>>, vector<1x1xf32>,
      %cst_52 = arith.constant 0.000000e+00 : f32
      %81 = vector.broadcast %cst_52 : f32 to vector<64x1xf32>
      %c0_53 = arith.constant 0 : index
      %c0_54 = arith.constant 0 : index
      %82 = vector.load %arg17[%c0_53, %c0_54] : memref<64x1xf32, #tpu.memory_space<vmem>>, vector<64x1xf32>
      tpu.vector_store %arg17[%c0_53, %c0_54], %81 {strides = array<i32>} : memref<64x1xf32, #tpu.memory_space<vmem>>, vector<64x1xf32>,
    } else {
    }
    %c0 = arith.constant 0 : index
    %c0_1 = arith.constant 0 : index
    %c0_2 = arith.constant 0 : index
    %3 = vector.load %arg2[%c0, %c0_1, %c0_2] : memref<1x8x128xf32, #tpu.memory_space<vmem>>, vector<1x8x128xf32>
    %4 = vector.shape_cast %3 : vector<1x8x128xf32> to vector<8x128xf32>
    %c0_3 = arith.constant 0 : index
    %c0_4 = arith.constant 0 : index
    %c0_5 = arith.constant 0 : index
    %5 = vector.load %arg3[%c0_3, %c0_4, %c0_5] : memref<1x8x128xf32, #tpu.memory_space<vmem>>, vector<1x8x128xf32>
    %6 = vector.shape_cast %5 : vector<1x8x128xf32> to vector<8x128xf32>
    %c0_6 = arith.constant 0 : index
    %c0_7 = arith.constant 0 : index
    %7 = vector.load %arg4[%c0_6, %c0_7] : memref<64x8xf32, #tpu.memory_space<vmem>>, vector<64x8xf32>
    %c0_8 = arith.constant 0 : index
    %c0_9 = arith.constant 0 : index
    %8 = vector.load %arg5[%c0_8, %c0_9] : memref<64x1xf32, #tpu.memory_space<vmem>>, vector<64x1xf32>
    %cst = arith.constant dense<0.000000e+00> : vector<64x128xf32>
    %9 = tpu.matmul %7, %4, %cst {dimension_numbers = #tpu.dot_dimension_numbers<[1], [0], [0], [1], [0, 0, 1, 1], [], []>} : vector<64x8xf32>, vector<8x128xf32>, vector<64x128xf32> -> vector<64x128xf32>
    %10 = vector.broadcast %8 : vector<64x1xf32> to vector<64x128xf32>
    %11 = arith.addf %9, %10 : vector<64x128xf32>
    %cst_10 = arith.constant 0.000000e+00 : f32
    %12 = vector.broadcast %cst_10 : f32 to vector<64x128xf32>
    %13 = arith.maximumf %11, %12 : vector<64x128xf32>
    %cst_11 = arith.constant dense<0.000000e+00> : vector<64x128xf32>
    %14 = tpu.matmul %7, %6, %cst_11 {dimension_numbers = #tpu.dot_dimension_numbers<[1], [0], [0], [1], [0, 0, 1, 1], [], []>} : vector<64x8xf32>, vector<8x128xf32>, vector<64x128xf32> -> vector<64x128xf32>
    %15 = vector.broadcast %8 : vector<64x1xf32> to vector<64x128xf32>
    %16 = arith.addf %14, %15 : vector<64x128xf32>
    %cst_12 = arith.constant 0.000000e+00 : f32
    %17 = vector.broadcast %cst_12 : f32 to vector<64x128xf32>
    %18 = arith.maximumf %16, %17 : vector<64x128xf32>
    %19 = arith.subf %13, %18 : vector<64x128xf32>
    %20 = math.absf %19 : vector<64x128xf32>
    %c0_13 = arith.constant 0 : index
    %c0_14 = arith.constant 0 : index
    %c0_15 = arith.constant 0 : index
    %21 = vector.load %arg14[%c0_13, %c0_14, %c0_15] : memref<1x64x128xf32, #tpu.memory_space<vmem>>, vector<1x64x128xf32>
    %22 = vector.shape_cast %21 : vector<1x64x128xf32> to vector<64x128xf32>
    %23 = vector.shape_cast %20 : vector<64x128xf32> to vector<1x64x128xf32>
    tpu.vector_store %arg14[%c0_13, %c0_14, %c0_15], %23 {strides = array<i32>} : memref<1x64x128xf32, #tpu.memory_space<vmem>>, vector<1x64x128xf32>,
    %c0_16 = arith.constant 0 : index
    %c0_17 = arith.constant 0 : index
    %24 = vector.load %arg6[%c0_16, %c0_17] : memref<256x64xf32, #tpu.memory_space<vmem>>, vector<256x64xf32>
    %cst_18 = arith.constant dense<0.000000e+00> : vector<256x128xf32>
    %25 = tpu.matmul %24, %20, %cst_18 {dimension_numbers = #tpu.dot_dimension_numbers<[1], [0], [0], [1], [0, 0, 1, 1], [], []>} : vector<256x64xf32>, vector<64x128xf32>, vector<256x128xf32> -> vector<256x128xf32>
    %c0_19 = arith.constant 0 : index
    %c0_20 = arith.constant 0 : index
    %26 = vector.load %arg7[%c0_19, %c0_20] : memref<256x1xf32, #tpu.memory_space<vmem>>, vector<256x1xf32>
    %27 = vector.broadcast %26 : vector<256x1xf32> to vector<256x128xf32>
    %28 = arith.addf %25, %27 : vector<256x128xf32>
    %29 = vector.extract_strided_slice %28 {offsets = [0, 0], sizes = [128, 128], strides = [1, 1]} : vector<256x128xf32> to vector<128x128xf32>
    %30 = math.tanh %29 : vector<128x128xf32>
    %31 = vector.extract_strided_slice %28 {offsets = [128, 0], sizes = [128, 128], strides = [1, 1]} : vector<256x128xf32> to vector<128x128xf32>
    %32 = arith.negf %31 : vector<128x128xf32>
    %33 = math.exp %32 : vector<128x128xf32>
    %cst_21 = arith.constant 1.000000e+00 : f32
    %34 = vector.broadcast %cst_21 : f32 to vector<128x128xf32>
    %35 = arith.addf %34, %33 : vector<128x128xf32>
    %36 = arith.divf %34, %35 : vector<128x128xf32>
    %37 = arith.mulf %30, %36 : vector<128x128xf32>
    %c0_22 = arith.constant 0 : index
    %c0_23 = arith.constant 0 : index
    %38 = vector.load %arg8[%c0_22, %c0_23] : memref<128x1xf32, #tpu.memory_space<vmem>>, vector<128x1xf32>
    %39 = vector.broadcast %38 : vector<128x1xf32> to vector<128x128xf32>
    %40 = arith.mulf %37, %39 : vector<128x128xf32>
    %cst_24 = arith.constant dense<0.000000e+00> : vector<128xf32>
    %41 = vector.multi_reduction <add>, %40, %cst_24 [0] : vector<128x128xf32> to vector<128xf32>
    %42 = vector.shape_cast %41 : vector<128xf32> to vector<1x128xf32>
    %c0_25 = arith.constant 0 : index
    %c0_26 = arith.constant 0 : index
    %43 = vector.load %arg9[%c0_25, %c0_26] : memref<1x1xf32, #tpu.memory_space<vmem>>, vector<1x1xf32>
    %44 = vector.broadcast %43 : vector<1x1xf32> to vector<1x128xf32>
    %45 = arith.addf %42, %44 : vector<1x128xf32>
    %c0_27 = arith.constant 0 : index
    %c0_28 = arith.constant 0 : index
    %c0_29 = arith.constant 0 : index
    %46 = vector.load %arg13[%c0_27, %c0_28, %c0_29] : memref<1x1x128xf32, #tpu.memory_space<vmem>>, vector<1x1x128xf32>
    %47 = vector.shape_cast %46 : vector<1x1x128xf32> to vector<1x128xf32>
    %48 = vector.shape_cast %45 : vector<1x128xf32> to vector<1x1x128xf32>
    tpu.vector_store %arg13[%c0_27, %c0_28, %c0_29], %48 {strides = array<i32>} : memref<1x1x128xf32, #tpu.memory_space<vmem>>, vector<1x1x128xf32>,
    %c0_30 = arith.constant 0 : index
    %c0_31 = arith.constant 0 : index
    %49 = vector.load %arg15[%c0_30, %c0_31] : memref<1x1xf32, #tpu.memory_space<vmem>>, vector<1x1xf32>
    %cst_32 = arith.constant dense<0xFF800000> : vector<1xf32>
    %50 = vector.multi_reduction <maximumf>, %45, %cst_32 [1] : vector<1x128xf32> to vector<1xf32>
    %51 = vector.shape_cast %50 : vector<1xf32> to vector<1x1xf32>
    %52 = arith.maximumf %49, %51 : vector<1x1xf32>
    %53 = arith.subf %49, %52 : vector<1x1xf32>
    %54 = math.exp %53 : vector<1x1xf32>
    %55 = vector.broadcast %52 : vector<1x1xf32> to vector<1x128xf32>
    %56 = arith.subf %45, %55 : vector<1x128xf32>
    %57 = math.exp %56 : vector<1x128xf32>
    %c0_33 = arith.constant 0 : index
    %c0_34 = arith.constant 0 : index
    %58 = vector.load %arg16[%c0_33, %c0_34] : memref<1x1xf32, #tpu.memory_space<vmem>>, vector<1x1xf32>
    %59 = arith.mulf %54, %58 : vector<1x1xf32>
    %cst_35 = arith.constant dense<0.000000e+00> : vector<1xf32>
    %60 = vector.multi_reduction <add>, %57, %cst_35 [1] : vector<1x128xf32> to vector<1xf32>
    %61 = vector.shape_cast %60 : vector<1xf32> to vector<1x1xf32>
    %62 = arith.addf %59, %61 : vector<1x1xf32>
    %c0_36 = arith.constant 0 : index
    %c0_37 = arith.constant 0 : index
    %63 = vector.load %arg16[%c0_36, %c0_37] : memref<1x1xf32, #tpu.memory_space<vmem>>, vector<1x1xf32>
    tpu.vector_store %arg16[%c0_36, %c0_37], %62 {strides = array<i32>} : memref<1x1xf32, #tpu.memory_space<vmem>>, vector<1x1xf32>,
    %c0_38 = arith.constant 0 : index
    %c0_39 = arith.constant 0 : index
    %64 = vector.load %arg17[%c0_38, %c0_39] : memref<64x1xf32, #tpu.memory_space<vmem>>, vector<64x1xf32>
    %65 = vector.broadcast %54 : vector<1x1xf32> to vector<64x1xf32>
    %66 = arith.mulf %65, %64 : vector<64x1xf32>
    %67 = vector.broadcast %57 : vector<1x128xf32> to vector<64x128xf32>
    %68 = arith.mulf %20, %67 : vector<64x128xf32>
    %cst_40 = arith.constant dense<0.000000e+00> : vector<64xf32>
    %69 = vector.multi_reduction <add>, %68, %cst_40 [1] : vector<64x128xf32> to vector<64xf32>
    %70 = vector.shape_cast %69 : vector<64xf32> to vector<64x1xf32>
    %71 = arith.addf %66, %70 : vector<64x1xf32>
    %c0_41 = arith.constant 0 : index
    %c0_42 = arith.constant 0 : index
    %72 = vector.load %arg17[%c0_41, %c0_42] : memref<64x1xf32, #tpu.memory_space<vmem>>, vector<64x1xf32>
    tpu.vector_store %arg17[%c0_41, %c0_42], %71 {strides = array<i32>} : memref<64x1xf32, #tpu.memory_space<vmem>>, vector<64x1xf32>,
    %c0_43 = arith.constant 0 : index
    %c0_44 = arith.constant 0 : index
    %73 = vector.load %arg15[%c0_43, %c0_44] : memref<1x1xf32, #tpu.memory_space<vmem>>, vector<1x1xf32>
    tpu.vector_store %arg15[%c0_43, %c0_44], %52 {strides = array<i32>} : memref<1x1xf32, #tpu.memory_space<vmem>>, vector<1x1xf32>,
    %c1_i32 = arith.constant 1 : i32
    %74 = arith.cmpi eq, %arg1, %c1_i32 : i32
    %75 = arith.extui %74 : i1 to i32
    %c0_i32_45 = arith.constant 0 : i32
    %76 = arith.cmpi ne, %75, %c0_i32_45 : i32
    scf.if %76 {
      %c0_46 = arith.constant 0 : index
      %c0_47 = arith.constant 0 : index
      %77 = vector.load %arg16[%c0_46, %c0_47] : memref<1x1xf32, #tpu.memory_space<vmem>>, vector<1x1xf32>
      %78 = tpu.reciprocal %77 {approx = true} : vector<1x1xf32> -> vector<1x1xf32>
      %c0_48 = arith.constant 0 : index
      %c0_49 = arith.constant 0 : index
      %79 = vector.load %arg17[%c0_48, %c0_49] : memref<64x1xf32, #tpu.memory_space<vmem>>, vector<64x1xf32>
      %80 = vector.broadcast %78 : vector<1x1xf32> to vector<64x1xf32>
      %81 = arith.mulf %79, %80 : vector<64x1xf32>
      %c0_50 = arith.constant 0 : index
      %c0_51 = arith.constant 0 : index
      %82 = vector.load %arg10[%c0_50, %c0_51] : memref<64x1xf32, #tpu.memory_space<vmem>>, vector<64x1xf32>
      %83 = arith.mulf %82, %81 : vector<64x1xf32>
      %cst_52 = arith.constant dense<0.000000e+00> : vector<1xf32>
      %84 = vector.multi_reduction <add>, %83, %cst_52 [0] : vector<64x1xf32> to vector<1xf32>
      %85 = vector.shape_cast %84 : vector<1xf32> to vector<1x1xf32>
      %c0_53 = arith.constant 0 : index
      %c0_54 = arith.constant 0 : index
      %86 = vector.load %arg11[%c0_53, %c0_54] : memref<1x1xf32, #tpu.memory_space<vmem>>, vector<1x1xf32>
      %87 = arith.addf %85, %86 : vector<1x1xf32>
      %88 = arith.negf %87 : vector<1x1xf32>
      %89 = math.exp %88 : vector<1x1xf32>
      %cst_55 = arith.constant 1.000000e+00 : f32
      %90 = vector.broadcast %cst_55 : f32 to vector<1x1xf32>
      %91 = arith.addf %90, %89 : vector<1x1xf32>
      %92 = arith.divf %90, %91 : vector<1x1xf32>
      %c0_56 = arith.constant 0 : index
      %c0_57 = arith.constant 0 : index
      %c0_58 = arith.constant 0 : index
      %93 = vector.load %arg12[%c0_56, %c0_57, %c0_58] : memref<1x1x1xf32, #tpu.memory_space<vmem>>, vector<1x1x1xf32>
      %94 = vector.shape_cast %93 : vector<1x1x1xf32> to vector<1x1xf32>
      %95 = vector.shape_cast %92 : vector<1x1xf32> to vector<1x1x1xf32>
      tpu.vector_store %arg12[%c0_56, %c0_57, %c0_58], %95 {strides = array<i32>} : memref<1x1x1xf32, #tpu.memory_space<vmem>>, vector<1x1x1xf32>,
    } else {
    }
    return
  }
  func.func @transform_0(%arg0: i32, %arg1: i32) -> (i32, i32, i32) {
    %c0_i32 = arith.constant 0 : i32
    %c0_i32_0 = arith.constant 0 : i32
    return %arg0, %c0_i32, %arg1 : i32, i32, i32
  }
  func.func @transform_1(%arg0: i32, %arg1: i32) -> (i32, i32, i32) {
    %c0_i32 = arith.constant 0 : i32
    %c0_i32_0 = arith.constant 0 : i32
    return %arg0, %c0_i32, %arg1 : i32, i32, i32
  }
  func.func @transform_2(%arg0: i32, %arg1: i32) -> (i32, i32) {
    %c0_i32 = arith.constant 0 : i32
    %c0_i32_0 = arith.constant 0 : i32
    %c0_i32_1 = arith.constant 0 : i32
    return %c0_i32, %c0_i32_0 : i32, i32
  }
  func.func @transform_3(%arg0: i32, %arg1: i32) -> (i32, i32) {
    %c0_i32 = arith.constant 0 : i32
    %c0_i32_0 = arith.constant 0 : i32
    %c0_i32_1 = arith.constant 0 : i32
    return %c0_i32, %c0_i32_0 : i32, i32
  }
  func.func @transform_4(%arg0: i32, %arg1: i32) -> (i32, i32) {
    %c0_i32 = arith.constant 0 : i32
    %c0_i32_0 = arith.constant 0 : i32
    %c0_i32_1 = arith.constant 0 : i32
    return %c0_i32, %c0_i32_0 : i32, i32
  }
  func.func @transform_5(%arg0: i32, %arg1: i32) -> (i32, i32) {
    %c0_i32 = arith.constant 0 : i32
    %c0_i32_0 = arith.constant 0 : i32
    %c0_i32_1 = arith.constant 0 : i32
    return %c0_i32, %c0_i32_0 : i32, i32
  }
  func.func @transform_6(%arg0: i32, %arg1: i32) -> (i32, i32) {
    %c0_i32 = arith.constant 0 : i32
    %c0_i32_0 = arith.constant 0 : i32
    %c0_i32_1 = arith.constant 0 : i32
    return %c0_i32, %c0_i32_0 : i32, i32
  }
  func.func @transform_7(%arg0: i32, %arg1: i32) -> (i32, i32) {
    %c0_i32 = arith.constant 0 : i32
    %c0_i32_0 = arith.constant 0 : i32
    %c0_i32_1 = arith.constant 0 : i32
    return %c0_i32, %c0_i32_0 : i32, i32
  }
  func.func @transform_8(%arg0: i32, %arg1: i32) -> (i32, i32) {
    %c0_i32 = arith.constant 0 : i32
    %c0_i32_0 = arith.constant 0 : i32
    %c0_i32_1 = arith.constant 0 : i32
    return %c0_i32, %c0_i32_0 : i32, i32
  }
  func.func @transform_9(%arg0: i32, %arg1: i32) -> (i32, i32) {
    %c0_i32 = arith.constant 0 : i32
    %c0_i32_0 = arith.constant 0 : i32
    %c0_i32_1 = arith.constant 0 : i32
    return %c0_i32, %c0_i32_0 : i32, i32
  }
  func.func @transform_10(%arg0: i32, %arg1: i32) -> (i32, i32, i32) {
    %c0_i32 = arith.constant 0 : i32
    %c0_i32_0 = arith.constant 0 : i32
    %c0_i32_1 = arith.constant 0 : i32
    return %arg0, %c0_i32, %c0_i32_0 : i32, i32, i32
  }
  func.func @transform_11(%arg0: i32, %arg1: i32) -> (i32, i32, i32) {
    %c0_i32 = arith.constant 0 : i32
    %c0_i32_0 = arith.constant 0 : i32
    return %arg0, %c0_i32, %arg1 : i32, i32, i32
  }
  func.func @transform_12(%arg0: i32, %arg1: i32) -> (i32, i32, i32) {
    %c0_i32 = arith.constant 0 : i32
    %c0_i32_0 = arith.constant 0 : i32
    return %arg0, %c0_i32, %arg1 : i32, i32, i32
  }
}

</mosaic_0001>

<bundles_post_ra>
// kernel: tpu_custom_call.1
= control target key start
LH: loop header
LB: loop body
LE: loop exit
PB: predicated region body
PF: predicated region fallthrough
CT: control target
= control target key end

     0   :  { %s3388_s0 = inlined_call_operand.vmem [shape: f32[2,8,256], index: 0, kind: input, shape index: {}]   ;;  %s3389_s1 = inlined_call_operand.vmem [shape: f32[2,8,256], index: 1, kind: input, shape index: {}]   ;;  %s3390_s2 = inlined_call_operand.vmem [shape: f32[64,8], index: 2, kind: input, shape index: {}]   ;;  %s3391_s3 = inlined_call_operand.vmem [shape: f32[64,1], index: 3, kind: input, shape index: {}]   ;;  %s3392_s4 = inlined_call_operand.vmem [shape: f32[256,64], index: 4, kind: input, shape index: {}]   ;;  %s3393_s5 = inlined_call_operand.vmem [shape: f32[256,1], index: 5, kind: input, shape index: {}]   ;;  %s3394_s6 = inlined_call_operand.vmem [shape: f32[128,1], index: 6, kind: input, shape index: {}]   ;;  %s3395_s7 = inlined_call_operand.<no memory space> [shape: f32[1,1], index: 7, kind: input, shape index: {}]   ;;  %s3396_s8 = inlined_call_operand.vmem [shape: f32[64,1], index: 8, kind: input, shape index: {}]   ;;  %s3397_s10 = inlined_call_operand.vmem [shape: f32[2,1,1], index: 10, kind: output, shape index: {0}]   ;;  %s3398_s11 = inlined_call_operand.hbm [shape: f32[2,1,256], index: 11, kind: output, shape index: {1}]   ;;  %s3399_s12 = inlined_call_operand.hbm [shape: f32[2,64,256], index: 12, kind: output, shape index: {2}]   ;;  %s3400_s9 = inlined_call_operand.<no memory space> [shape: f32[1,1], index: 9, kind: input, shape index: {}]  }
   0x1   :  { %3412 = sst [smem:[#allocation23_spill]] %s3399_s12  ;;  %v18_v0 = vstv %s3395_s7  ;;  %v20_v1 = vstv %s3400_s9 }
   0x2   :  { %19 = vst [vmem:[#allocation5] sm:$0x1] %v18_v0  ;;  %21 = vst [vmem:[#allocation6] sm:$0x1] %v20_v1 }
   0x3   :  { %22 = vsyncpa [#allocation8], 0 }
   0x4   :  { %24 = vsyncpa [#allocation8 + $0x1], 0 }
   0x5   :  { %25 = vsyncpa [#allocation10], 0 }
   0x6   :  { %27 = vsyncpa [#allocation10 + $0x1], 0  ;;  %s2667_s25 = smov 0   ;;  %s2669_s26 = smov 0  }
   0x7   :  { %s2671_s27 = smov 0   ;;  %s2673_s28 = smov 0  }
   0x8   :  { %s2675_s29 = smov 0   ;;  %s2677_s7 = smov 0  }
   0x9   :  { %s2679_s30 = smov 0   ;;  %s2681_s9 = smov 0  }
   0xa LB: > { %3413 = sst [smem:[#allocation13_spill]] %s2558_s25  ;;  %s2012_s13 = sadd.s32 4294967295, %s2586_s9   ;;  %s2586_s9 = sphi %s2681_s9, %s33_s9   ;;  %s2582_s30 = sphi %s2679_s30, %s3436_s30   ;;  %s2578_s7 = sphi %s2677_s7, %s3435_s7   ;;  %s2574_s29 = sphi %s2675_s29, %s3434_s29   ;;  %s2570_s28 = sphi %s2673_s28, %s3433_s28   ;;  %s2566_s27 = sphi %s2671_s27, %s3432_s27   ;;  %s2562_s26 = sphi %s2669_s26, %s3431_s26   ;;  %s2558_s25 = sphi %s2667_s25, %s3430_s25  }
   0xb   : > { %3414 = sst [smem:[#allocation14_spill]] %s2562_s26  ;;  %s2013_s14 = sadd.s32 4294967294, %s2586_s9  }
   0xc   : > { %3415 = sst [smem:[#allocation15_spill]] %s2566_s27  ;;  %s42_s15 = sadd.s32 1, %s2578_s7 }
   0xd   : > { %3416 = sst [smem:[#allocation16_spill]] %s2578_s7  ;;  %p43_p0 = scmp.ge.s32.totalorder %s42_s15, 2 }
   0xe   : > { %3417 = sst [smem:[#allocation17_spill]] %s2582_s30  ;;  %s45_s16 = sadd.s32 1, %s2582_s30 }
   0xf   : > { %3418 = sst [smem:[#allocation18_spill]] %s2586_s9  ;;  %p314_p1 = scmp.ne.s32.totalorder %s2566_s27, %s2562_s26 }
  0x10   : > { %p315_p2 = scmp.eq.s32.totalorder %s2012_s13, 3  ;;  %s3438_s15 = smov (%p43_p0, %s42_s15), 0 }
  0x11   : > { %3419 = sst [smem:[#allocation19_spill]] %s3438_s15  ;;  %s3440_s16 = smov (!%p43_p0, %s45_s16), %s2582_s30 }
  0x12   : > { %s300_s17 = ssub.s32 %s2578_s7, %s3438_s15  ;;  %p2718_p3 = por %p315_p2, %p314_p1 }
  0x13   : > { %p47_p4 = scmp.ge.s32.totalorder %s3440_s16, 2  ;;  %p320_p5 = scmp.ne.s32.totalorder %s2562_s26, %s2558_s25 }
  0x14   : > { %p321_p6 = scmp.eq.s32.totalorder %s2013_s14, 3  ;;  %p2016_p7 = scmp.ge.s32.totalorder %s2586_s9, 1 }
  0x15   : > { %s3442_s16 = smov (%p47_p4, %s3440_s16), 0  ;;  %p413_p9 = scmp.lt.s32.totalorder %s2586_s9, 5 }
  0x16   : > { %3421 = sst [smem:[#allocation20_spill]] %s3442_s16  ;;  %p2727_p8 = por %p321_p6, %p320_p5 }
  0x17   : > { %s299_s20 = ssub.s32 %s2582_s30, %s3442_s16  ;;  %s304_s21 = sadd.s32 1, %s2566_s27 }
  0x18   : > { %s3422_s19 = scalar_select %p2727_p8, 1, 0 }
  0x19   : > { %s301_s22 = sor.u32 %s300_s17, %s299_s20  ;;  %p414_p10 = pnand %p2016_p7, %p413_p9 }
  0x1a   : > { %3423 = sst [smem:[#allocation21_spill]] %s3422_s19  ;;  %p302_p11 = scmp.eq.s32.totalorder %s301_s22, 0 }
  0x1b   : > { %417 = sbr.rel (%p414_p10) target bundleno = 1160 (0x488), region = 60  ;;  %s2739_s24 = sand.u32 (!%p414_p10), 1, %s2562_s26  }
  0x1c   : > { %s2736_s23 = scalar_select %p302_p11, %s2566_s27, %s304_s21  }
  0x1d   : > { %p473_p12 = scmp.lt.s32.totalorder (!%p414_p10), %s2574_s29, 1  ;;  %s2017_s13 = sshll.u32 (!%p414_p10), %s2739_s24, 6 }
  0x1e   : > { %3424 = sst [smem:[#allocation22_spill]] %s2736_s23  ;;  %p475_p13 = scmp.lt.s32.totalorder (!%p414_p10), %s2570_s28, 1 }
  0x1f   : > { %s465_s9 = scalar_lea.vmem (!%p414_p10), [#allocation7], %s2739_s24  ;;  %s2760_s12 = scalar_lea.vmem (!%p414_p10), [#allocation9], %s2017_s13 }
  0x20   : > { %p2022_p0 = scmp.ne.s32.totalorder (!%p414_p10), %s2570_s28, 0 }
  0x22   : > { %s2745_s14 = scalar_select %p473_p12, %s2574_s29, 1 }
  0x23   : > { %s476_s17 = scalar_select %p475_p13, %s2570_s28, 1 }
  0x24   : > { %s2018_s20 = sshll.u32 %s2745_s14, 1  ;;  %s491_s16 = scalar_lea.vmem %s3397_s10, %s2745_s14  ;;  %vm496_vm0 = vcmask (!%p2022_p0), 0   ;;  %vm499_vm1 = vcmask (!%p2022_p0), 7168   ;;  %v2588_v2 = vmov (!%p2022_p0), -inf   ;;  %v2589_v3 = vmov (!%p2022_p0), 0.0  }
  0x25   : > { %s478_s15 = sadd.s32 %s2018_s20, %s476_s17  ;;  %495 = sbr.rel (%p2022_p0) target bundleno = 44 (0x2c), region = 64  ;;  %497 = vst.msk [vmem:[#allocation2] sm:$0x1] (!%p2022_p0), %vm496_vm0, %v2588_v2  ;;  %498 = vst.msk [vmem:[#allocation3] sm:$0x1] (!%p2022_p0), %vm496_vm0, %v2589_v3 }
  0x26   : > { %s2019_s30 = sshll.u32 %s478_s15, 3  ;;  %500 = vst.msk [vmem:[#allocation4] sm:$0xff] (!%p2022_p0), %vm499_vm1, %v2589_v3  ;;  %501 = vst.msk [vmem:[#allocation4 + $0x8] sm:$0xff] (!%p2022_p0), %vm499_vm1, %v2589_v3 }
  0x27   : > { %s480_s27 = scalar_lea.vmem %s3388_s0, %s2019_s30  ;;  %s488_s25 = scalar_lea.vmem %s3389_s1, %s2019_s30  ;;  %502 = vst.msk [vmem:[#allocation4 + $0x10] sm:$0xff] (!%p2022_p0), %vm499_vm1, %v2589_v3  ;;  %503 = vst.msk [vmem:[#allocation4 + $0x18] sm:$0xff] (!%p2022_p0), %vm499_vm1, %v2589_v3 }
  0x28   : > { %504 = vst.msk [vmem:[#allocation4 + $0x20] sm:$0xff] (!%p2022_p0), %vm499_vm1, %v2589_v3  ;;  %505 = vst.msk [vmem:[#allocation4 + $0x28] sm:$0xff] (!%p2022_p0), %vm499_vm1, %v2589_v3 }
  0x29   : > { %506 = vst.msk [vmem:[#allocation4 + $0x30] sm:$0xff] (!%p2022_p0), %vm499_vm1, %v2589_v3  ;;  %507 = vst.msk [vmem:[#allocation4 + $0x38] sm:$0xff] (!%p2022_p0), %vm499_vm1, %v2589_v3 }
  0x2c PF: > { %v508_v4 = vld [vmem:[%s480_s27] sm:$0xff]  ;;  %v520_v6 = vld [vmem:[%s3391_s3 + $0x10] sm:$0xff]  ;;  %v2590_v7 = vmov 0   ;;  %vm566_vm2 = vcmask 64512   ;;  %v511_v10 = vld [vmem:[%s3390_s2 + $0x8] sm:$0xff]  ;;  %vm1065_vm3 = vcmask 523264  }
  0x2d   : > { %v509_v5 = vld [vmem:[%s488_s25] sm:$0xff]  ;;  %2353 = vset.pattern.permute.xlu1 %v2590_v7  ;;  %2352 = vset.pattern.permute.xlu0 %v2590_v7  ;;  %v521_v11 = vld [vmem:[%s3391_s3 + $0x18] sm:$0xff]  ;;  %v519_v12 = vld [vmem:[%s3391_s3 + $0x8] sm:$0xff]  ;;  %vm1684_vm4 = vcmask 0   ;;  %vm1740_vm5 = vcmask 7168   ;;  %p2087_p1 = scmp.ne.s32.totalorder %s2570_s28, 1 }
  0x2e   : > { %v518_v8 = vld [vmem:[%s3391_s3] sm:$0xff]  ;;  %2154 = vmatprep.subr.mxu0 %v508_v4  ;;  %2168 = vmatprep.subr.mxu1 %v509_v5  ;;  %v512_v13 = vld [vmem:[%s3390_s2 + $0x10] sm:$0xff]  ;;  %v513_v14 = vld [vmem:[%s3390_s2 + $0x18] sm:$0xff] }
  0x2f   : > { %v510_v9 = vld [vmem:[%s3390_s2] sm:$0xff]  ;;  %538 = vperm.xlu1 %2353, %v520_v6   ;;  %528 = vperm.xlu0 %2352, %v518_v8   ;;  %v523_v15 = vld [vmem:[%s3391_s3 + $0x28] sm:$0xff]  ;;  %v525_v19 = vld [vmem:[%s3391_s3 + $0x38] sm:$0xff] }
  0x30   : > { %2155 = vmatpush3.msra.mxu0 %v508_v4  ;;  %2156 = vmatprep.mubr.msk.f32.mxu0 %vm566_vm2, %v510_v9  ;;  %v522_v16 = vld [vmem:[%s3391_s3 + $0x20] sm:$0xff]  ;;  %v515_v18 = vld [vmem:[%s3390_s2 + $0x28] sm:$0xff]  ;;  %v524_v20 = vld [vmem:[%s3391_s3 + $0x30] sm:$0xff] }
  0x31   : > { %2169 = vmatpush3.msra.mxu1 %v509_v5  ;;  %2170 = vmatprep.mubr.msk.f32.mxu1 %vm566_vm2, %v510_v9  ;;  %v514_v17 = vld [vmem:[%s3390_s2 + $0x20] sm:$0xff]  ;;  %v516_v21 = vld [vmem:[%s3390_s2 + $0x30] sm:$0xff]  ;;  %v517_v22 = vld [vmem:[%s3390_s2 + $0x38] sm:$0xff] }
  0x32   : > { %2157 = vmatmul.mubr.msk.f32.vlgmr.msra.gmra.mrb[0].mxu0 %vm566_vm2, %v511_v10  ;;  %2171 = vmatmul.mubr.msk.f32.vlgmr.msra.gmra.mrb[0].mxu1 %vm566_vm2, %v511_v10  ;;  %v890_v23 = vld [vmem:[%s3393_s5 + $0x88] sm:$0xff]  ;;  %v889_v24 = vld [vmem:[%s3393_s5 + $0x80] sm:$0xff]  ;;  %v892_v25 = vld [vmem:[%s3393_s5 + $0x98] sm:$0xff] }
  0x33   : > { %543 = vperm.xlu1 %2353, %v521_v11   ;;  %533 = vperm.xlu0 %2352, %v519_v12   ;;  %v891_v26 = vld [vmem:[%s3393_s5 + $0x90] sm:$0xff]  ;;  %v894_v27 = vld [vmem:[%s3393_s5 + $0xa8] sm:$0xff]  ;;  %v893_v28 = vld [vmem:[%s3393_s5 + $0xa0] sm:$0xff] }
  0x34   : > { %2159 = vmatprep.mubr.msk.f32.mxu0 %vm566_vm2, %v512_v13  ;;  %2173 = vmatprep.mubr.msk.f32.mxu1 %vm566_vm2, %v512_v13  ;;  %v896_v29 = vld [vmem:[%s3393_s5 + $0xb8] sm:$0xff]  ;;  %v895_v30 = vld [vmem:[%s3393_s5 + $0xb0] sm:$0xff]  ;;  %v873_v31 = vld [vmem:[%s3393_s5] sm:$0xff] }
  0x35   : > { %v897_v32 = vld [vmem:[%s3393_s5 + $0xc0] sm:$0xff]  ;;  %v898_v33 = vld [vmem:[%s3393_s5 + $0xc8] sm:$0xff]  ;;  %v899_v35 = vld [vmem:[%s3393_s5 + $0xd0] sm:$0xff] }
  0x36   : > { %2160 = vmatmul.mubr.msk.f32.gmra.mrb[2].mxu0 %vm566_vm2, %v513_v14  ;;  %2174 = vmatmul.mubr.msk.f32.gmra.mrb[2].mxu1 %vm566_vm2, %v513_v14  ;;  %v874_v34 = vld [vmem:[%s3393_s5 + $0x8] sm:$0xff]  ;;  %v875_v36 = vld [vmem:[%s3393_s5 + $0x10] sm:$0xff]  ;;  %v900_v37 = vld [vmem:[%s3393_s5 + $0xd8] sm:$0xff] }
  0x37   : > { %553 = vperm.xlu1 %2353, %v523_v15   ;;  %548 = vperm.xlu0 %2352, %v522_v16   ;;  %v876_v38 = vld [vmem:[%s3393_s5 + $0x18] sm:$0xff]  ;;  %v901_v39 = vld [vmem:[%s3393_s5 + $0xe0] sm:$0xff]  ;;  %v902_v41 = vld [vmem:[%s3393_s5 + $0xe8] sm:$0xff] }
  0x38   : > { %2162 = vmatprep.mubr.msk.f32.mxu0 %vm566_vm2, %v514_v17  ;;  %2176 = vmatprep.mubr.msk.f32.mxu1 %vm566_vm2, %v514_v17  ;;  %v877_v40 = vld [vmem:[%s3393_s5 + $0x20] sm:$0xff]  ;;  %v878_v42 = vld [vmem:[%s3393_s5 + $0x28] sm:$0xff]  ;;  %v903_v43 = vld [vmem:[%s3393_s5 + $0xf0] sm:$0xff] }
  0x39   : > { %v879_v44 = vld [vmem:[%s3393_s5 + $0x30] sm:$0xff]  ;;  %v904_v45 = vld [vmem:[%s3393_s5 + $0xf8] sm:$0xff]  ;;  %v1515_v47 = vld [vmem:[%s3394_s6] sm:$0xff] }
  0x3a   : > { %2163 = vmatmul.mubr.msk.f32.gmra.mrb[4].mxu0 %vm566_vm2, %v515_v18  ;;  %2177 = vmatmul.mubr.msk.f32.gmra.mrb[4].mxu1 %vm566_vm2, %v515_v18  ;;  %v880_v46 = vld [vmem:[%s3393_s5 + $0x38] sm:$0xff]  ;;  %v881_v48 = vld [vmem:[%s3393_s5 + $0x40] sm:$0xff]  ;;  %v882_v49 = vld [vmem:[%s3393_s5 + $0x48] sm:$0xff] }
  0x3b   : > { %563 = vperm.xlu1 %2353, %v525_v19   ;;  %558 = vperm.xlu0 %2352, %v524_v20   ;;  %v1516_v50 = vld [vmem:[%s3394_s6 + $0x8] sm:$0xff]  ;;  %v883_v51 = vld [vmem:[%s3393_s5 + $0x50] sm:$0xff]  ;;  %v884_v53 = vld [vmem:[%s3393_s5 + $0x58] sm:$0xff] }
  0x3c   : > { %2165 = vmatprep.mubr.msk.f32.mxu0 %vm566_vm2, %v516_v21  ;;  %2179 = vmatprep.mubr.msk.f32.mxu1 %vm566_vm2, %v516_v21  ;;  %v1517_v52 = vld [vmem:[%s3394_s6 + $0x10] sm:$0xff]  ;;  %v1518_v54 = vld [vmem:[%s3394_s6 + $0x18] sm:$0xff]  ;;  %v885_v55 = vld [vmem:[%s3393_s5 + $0x60] sm:$0xff] }
  0x3d   : > { %v1519_v56 = vld [vmem:[%s3394_s6 + $0x20] sm:$0xff]  ;;  %v886_v57 = vld [vmem:[%s3393_s5 + $0x68] sm:$0xff]  ;;  %v887_v59 = vld [vmem:[%s3393_s5 + $0x70] sm:$0xff] }
  0x3e   : > { %2166 = vmatmul.mubr.msk.f32.gmra.mrb[6].mxu0 %vm566_vm2, %v517_v22  ;;  %2180 = vmatmul.mubr.msk.f32.gmra.mrb[6].mxu1 %vm566_vm2, %v517_v22  ;;  %v1520_v58 = vld [vmem:[%s3394_s6 + $0x28] sm:$0xff]  ;;  %v1521_v60 = vld [vmem:[%s3394_s6 + $0x30] sm:$0xff]  ;;  %v888_v61 = vld [vmem:[%s3393_s5 + $0x78] sm:$0xff] }
  0x3f   : > { %992 = vperm.xlu1 %2353, %v890_v23   ;;  %987 = vperm.xlu0 %2352, %v889_v24   ;;  %v1522_v62 = vld [vmem:[%s3394_s6 + $0x38] sm:$0xff]  ;;  %v1524_v63 = vld [vmem:[%s3394_s6 + $0x48] sm:$0xff]  ;;  %v1523_v0 = vld [vmem:[%s3394_s6 + $0x40] sm:$0xff] }
  0x40   : > { %v1526_v1 = vld [vmem:[%s3394_s6 + $0x58] sm:$0xff]  ;;  %v1525_v2 = vld [vmem:[%s3394_s6 + $0x50] sm:$0xff]  ;;  %v1528_v3 = vld [vmem:[%s3394_s6 + $0x68] sm:$0xff] }
  0x41   : > { %v1527_v4 = vld [vmem:[%s3394_s6 + $0x60] sm:$0xff]  ;;  %v1530_v5 = vld [vmem:[%s3394_s6 + $0x78] sm:$0xff]  ;;  %v1529_v6 = vld [vmem:[%s3394_s6 + $0x70] sm:$0xff] }
  0x42   : > { %v1648_v7 = vld [vmem:[#allocation5] sm:$0x1] }
  0x43   : > { %1002 = vperm.xlu1 %2353, %v892_v25   ;;  %997 = vperm.xlu0 %2352, %v891_v26   ;;  %v841_v8 = vld [vmem:[%s3392_s4] sm:$0xff] }
  0x44   : > { %v857_v9 = vld [vmem:[%s3392_s4 + $0x80] sm:$0xff]  ;;  %2198 = vmatprep.mubr.msk.f32.mxu0 %vm1065_vm3, %v841_v8 }
  0x45   : > { %2222 = vmatprep.mubr.msk.f32.mxu1 %vm1065_vm3, %v857_v9 }
  0x47   : > { %1012 = vperm.xlu1 %2353, %v894_v27   ;;  %1007 = vperm.xlu0 %2352, %v893_v28  }
  0x4b   : > { %1022 = vperm.xlu1 %2353, %v896_v29   ;;  %1017 = vperm.xlu0 %2352, %v895_v30  }
  0x4f   : > { %907 = vperm.xlu1 %2353, %v873_v31   ;;  %1027 = vperm.xlu0 %2352, %v897_v32  }
  0x53   : > { %1032 = vperm.xlu1 %2353, %v898_v33   ;;  %912 = vperm.xlu0 %2352, %v874_v34  }
  0x57   : > { %1037 = vperm.xlu1 %2353, %v899_v35   ;;  %917 = vperm.xlu0 %2352, %v875_v36  }
  0x5b   : > { %1042 = vperm.xlu1 %2353, %v900_v37   ;;  %922 = vperm.xlu0 %2352, %v876_v38  }
  0x5f   : > { %1047 = vperm.xlu1 %2353, %v901_v39   ;;  %927 = vperm.xlu0 %2352, %v877_v40  }
  0x63   : > { %1052 = vperm.xlu1 %2353, %v902_v41   ;;  %932 = vperm.xlu0 %2352, %v878_v42  }
  0x67   : > { %1057 = vperm.xlu1 %2353, %v903_v43   ;;  %937 = vperm.xlu0 %2352, %v879_v44  }
  0x6b   : > { %1062 = vperm.xlu1 %2353, %v904_v45   ;;  %942 = vperm.xlu0 %2352, %v880_v46  }
  0x6f   : > { %1533 = vperm.xlu1 %2353, %v1515_v47   ;;  %947 = vperm.xlu0 %2352, %v881_v48  }
  0x73   : > { %952 = vperm.xlu1 %2353, %v882_v49   ;;  %1538 = vperm.xlu0 %2352, %v1516_v50  }
  0x77   : > { %957 = vperm.xlu1 %2353, %v883_v51   ;;  %1543 = vperm.xlu0 %2352, %v1517_v52  }
  0x7b   : > { %962 = vperm.xlu1 %2353, %v884_v53   ;;  %1548 = vperm.xlu0 %2352, %v1518_v54  }
  0x7f   : > { %967 = vperm.xlu1 %2353, %v885_v55   ;;  %1553 = vperm.xlu0 %2352, %v1519_v56  }
  0x83   : > { %972 = vperm.xlu1 %2353, %v886_v57   ;;  %1558 = vperm.xlu0 %2352, %v1520_v58  }
  0x87   : > { %977 = vperm.xlu1 %2353, %v887_v59   ;;  %1563 = vperm.xlu0 %2352, %v1521_v60  }
  0x8b   : > { %982 = vperm.xlu1 %2353, %v888_v61   ;;  %1568 = vperm.xlu0 %2352, %v1522_v62  }
  0x8f   : > { %1578 = vperm.xlu1 %2353, %v1524_v63   ;;  %1573 = vperm.xlu0 %2352, %v1523_v0  }
  0x93   : > { %1588 = vperm.xlu1 %2353, %v1526_v1   ;;  %1583 = vperm.xlu0 %2352, %v1525_v2  }
  0x97   : > { %1598 = vperm.xlu1 %2353, %v1528_v3   ;;  %1593 = vperm.xlu0 %2352, %v1527_v4  }
  0x9b   : > { %1608 = vperm.xlu1 %2353, %v1530_v5   ;;  %1603 = vperm.xlu0 %2352, %v1529_v6  }
  0x9f   : > { %1651 = vperm.xlu0 %2352, %v1648_v7  }
  0xae   : > { %v539_v10 = vpop.permute.xlu1 %538  ;;  %v529_v11 = vpop.permute.xlu0 %528 }
  0xb2   : > { %v544_v12 = vpop.permute.xlu1 %543  ;;  %v534_v13 = vpop.permute.xlu0 %533 }
  0xb6   : > { %v554_v22 = vpop.permute.xlu1 %553  ;;  %v549_v23 = vpop.permute.xlu0 %548 }
  0xba   : > { %v564_v55 = vpop.permute.xlu1 %563  ;;  %v559_v56 = vpop.permute.xlu0 %558 }
 0x105   : > { %v2158_v14 = vpop.f32.mrb[0].mxu0  ;;  %v2172_v15 = vpop.f32.mrb[0].mxu1 }
 0x106   : > { %v663_v16 = vadd.f32 %v2158_v14, %v534_v13  ;;  %v776_v17 = vadd.f32 %v2172_v15, %v534_v13  ;;  %v657_v18 = vpop.f32.mrb[1].mxu0  ;;  %v770_v19 = vpop.f32.mrb[1].mxu1 }
 0x107   : > { %v658_v20 = vadd.f32 %v657_v18, %v529_v11  ;;  %v771_v21 = vadd.f32 %v770_v19, %v529_v11 }
 0x108   : > { %v697_v24 = vmax.f32 %v663_v16, 0.0  ;;  %v810_v25 = vmax.f32 %v776_v17, 0.0 }
 0x109   : > { %v696_v26 = vmax.f32 %v658_v20, 0.0  ;;  %v809_v27 = vmax.f32 %v771_v21, 0.0  ;;  %v2161_v28 = vpop.f32.mrb[2].mxu0  ;;  %v2175_v29 = vpop.f32.mrb[2].mxu1 }
 0x10a   : > { %v818_v30 = vsub.f32 %v697_v24, %v810_v25  ;;  %v673_v31 = vadd.f32 %v2161_v28, %v544_v12  ;;  %v786_v32 = vadd.f32 %v2175_v29, %v544_v12  ;;  %v667_v33 = vpop.f32.mrb[3].mxu0  ;;  %v780_v34 = vpop.f32.mrb[3].mxu1  ;;  %v843_v24 = vld [vmem:[%s3392_s4 + $0x10] sm:$0xff]  ;;  %v845_v28 = vld [vmem:[%s3392_s4 + $0x20] sm:$0xff] }
 0x10b   : > { %v817_v35 = vsub.f32 %v696_v26, %v809_v27  ;;  %v668_v36 = vadd.f32 %v667_v33, %v539_v10  ;;  %v781_v37 = vadd.f32 %v780_v34, %v539_v10  ;;  %v859_v25 = vld [vmem:[%s3392_s4 + $0x90] sm:$0xff]  ;;  %v844_v26 = vld [vmem:[%s3392_s4 + $0x18] sm:$0xff]  ;;  %v861_v29 = vld [vmem:[%s3392_s4 + $0xa0] sm:$0xff] }
 0x10c   : > { %v2979_v38 = vand.u32 2147483647, %v818_v30  ;;  %v699_v39 = vmax.f32 %v673_v31, 0.0  ;;  %v812_v40 = vmax.f32 %v786_v32, 0.0  ;;  %v860_v27 = vld [vmem:[%s3392_s4 + $0x98] sm:$0xff]  ;;  %v846_v30 = vld [vmem:[%s3392_s4 + $0x28] sm:$0xff] }
 0x10d   : > { %v2981_v41 = vand.u32 2147483647, %v817_v35  ;;  %v698_v42 = vmax.f32 %v668_v36, 0.0  ;;  %v811_v43 = vmax.f32 %v781_v37, 0.0  ;;  %v2164_v44 = vpop.f32.mrb[4].mxu0  ;;  %v2178_v45 = vpop.f32.mrb[4].mxu1 }
 0x10e   : > { %834 = vst [vmem:[%s2760_s12 + $0x8] sm:$0xff] %v2979_v38  ;;  %v820_v46 = vsub.f32 %v699_v39, %v812_v40  ;;  %v683_v47 = vadd.f32 %v2164_v44, %v554_v22  ;;  %v796_v48 = vadd.f32 %v2178_v45, %v554_v22  ;;  %v677_v49 = vpop.f32.mrb[5].mxu0  ;;  %v790_v50 = vpop.f32.mrb[5].mxu1  ;;  %v842_v22 = vld [vmem:[%s3392_s4 + $0x8] sm:$0xff]  ;;  %v847_v32 = vld [vmem:[%s3392_s4 + $0x30] sm:$0xff]  ;;  %v848_v34 = vld [vmem:[%s3392_s4 + $0x38] sm:$0xff] }
 0x10f   : > { %833 = vst [vmem:[%s2760_s12] sm:$0xff] %v2981_v41  ;;  %v819_v51 = vsub.f32 %v698_v42, %v811_v43  ;;  %v678_v52 = vadd.f32 %v677_v49, %v549_v23  ;;  %v791_v53 = vadd.f32 %v790_v50, %v549_v23  ;;  %v2246_v54 = vpack.c.bf16 %v2979_v38, %v2981_v41  ;;  %v858_v23 = vld [vmem:[%s3392_s4 + $0x88] sm:$0xff]  ;;  %v863_v33 = vld [vmem:[%s3392_s4 + $0xb0] sm:$0xff]  ;;  %v864_v35 = vld [vmem:[%s3392_s4 + $0xb8] sm:$0xff] }
 0x110   : > { %v2989_v57 = vand.u32 2147483647, %v820_v46  ;;  %v701_v58 = vmax.f32 %v683_v47, 0.0  ;;  %v814_v59 = vmax.f32 %v796_v48, 0.0  ;;  %v862_v31 = vld [vmem:[%s3392_s4 + $0xa8] sm:$0xff]  ;;  %v849_v36 = vld [vmem:[%s3392_s4 + $0x40] sm:$0xff] }
 0x111   : > { %v2991_v60 = vand.u32 2147483647, %v819_v51  ;;  %v700_v61 = vmax.f32 %v678_v52, 0.0  ;;  %v813_v62 = vmax.f32 %v791_v53, 0.0  ;;  %v2167_v63 = vpop.f32.mrb[6].mxu0  ;;  %v2181_v0 = vpop.f32.mrb[6].mxu1  ;;  %2247 = vmatprep.subr.bf16.mxu0 %v2246_v54  ;;  %2262 = vmatprep.subr.bf16.mxu1 %v2246_v54 }
 0x112   : > { %836 = vst [vmem:[%s2760_s12 + $0x18] sm:$0xff] %v2989_v57  ;;  %v822_v1 = vsub.f32 %v701_v58, %v814_v59  ;;  %v693_v2 = vadd.f32 %v2167_v63, %v564_v55  ;;  %v806_v3 = vadd.f32 %v2181_v0, %v564_v55  ;;  %v687_v4 = vpop.f32.mrb[7].mxu0  ;;  %v800_v5 = vpop.f32.mrb[7].mxu1  ;;  %2249 = vmatpush3.bf16.msra.mxu0 %v2246_v54  ;;  %v865_v37 = vld [vmem:[%s3392_s4 + $0xc0] sm:$0xff]  ;;  %v850_v39 = vld [vmem:[%s3392_s4 + $0x48] sm:$0xff]  ;;  %v851_v42 = vld [vmem:[%s3392_s4 + $0x50] sm:$0xff] }
 0x113   : > { %2266 = vmatpush3.bf16.msra.mxu1 %v2246_v54  ;;  %835 = vst [vmem:[%s2760_s12 + $0x10] sm:$0xff] %v2991_v60  ;;  %v821_v6 = vsub.f32 %v700_v61, %v813_v62  ;;  %v688_v7 = vadd.f32 %v687_v4, %v559_v56  ;;  %v801_v8 = vadd.f32 %v800_v5, %v559_v56  ;;  %v866_v40 = vld [vmem:[%s3392_s4 + $0xc8] sm:$0xff]  ;;  %v867_v43 = vld [vmem:[%s3392_s4 + $0xd0] sm:$0xff]  ;;  %v852_v44 = vld [vmem:[%s3392_s4 + $0x58] sm:$0xff]  ;;  %v988_v54 = vpop.permute.xlu0 %987  ;;  %v993_v55 = vpop.permute.xlu1 %992 }
 0x114   : > { %v2250_v9 = vpack.c.bf16 %v2989_v57, %v2991_v60  ;;  %v2999_v10 = vand.u32 2147483647, %v822_v1  ;;  %v703_v11 = vmax.f32 %v693_v2, 0.0  ;;  %v816_v12 = vmax.f32 %v806_v3, 0.0  ;;  %v868_v45 = vld [vmem:[%s3392_s4 + $0xd8] sm:$0xff]  ;;  %v853_v46 = vld [vmem:[%s3392_s4 + $0x60] sm:$0xff] }
 0x115   : > { %v3001_v13 = vand.u32 2147483647, %v821_v6  ;;  %v702_v14 = vmax.f32 %v688_v7, 0.0  ;;  %v815_v15 = vmax.f32 %v801_v8, 0.0  ;;  %v869_v47 = vld [vmem:[%s3392_s4 + $0xe0] sm:$0xff]  ;;  %v854_v48 = vld [vmem:[%s3392_s4 + $0x68] sm:$0xff] }
 0x116   : > { %2251 = vmatprep.subr.bf16.mxu0 %v2250_v9  ;;  %2263 = vmatprep.subr.bf16.mxu1 %v2250_v9  ;;  %838 = vst [vmem:[%s2760_s12 + $0x28] sm:$0xff] %v2999_v10  ;;  %v824_v16 = vsub.f32 %v703_v11, %v816_v12  ;;  %v870_v49 = vld [vmem:[%s3392_s4 + $0xe8] sm:$0xff]  ;;  %v855_v50 = vld [vmem:[%s3392_s4 + $0x70] sm:$0xff]  ;;  %v856_v52 = vld [vmem:[%s3392_s4 + $0x78] sm:$0xff] }
 0x117   : > { %2253 = vmatpush3.bf16.msra.mxu0 %v2250_v9  ;;  %2267 = vmatpush3.bf16.msra.mxu1 %v2250_v9  ;;  %837 = vst [vmem:[%s2760_s12 + $0x20] sm:$0xff] %v3001_v13  ;;  %v823_v17 = vsub.f32 %v702_v14, %v815_v15  ;;  %v2254_v18 = vpack.c.bf16 %v2999_v10, %v3001_v13  ;;  %v871_v51 = vld [vmem:[%s3392_s4 + $0xf0] sm:$0xff]  ;;  %v872_v53 = vld [vmem:[%s3392_s4 + $0xf8] sm:$0xff]  ;;  %v998_v56 = vpop.permute.xlu0 %997  ;;  %v1003_v58 = vpop.permute.xlu1 %1002 }
 0x118   : > { %v3009_v19 = vand.u32 2147483647, %v824_v16 }
 0x119   : > { %v3011_v20 = vand.u32 2147483647, %v823_v17  ;;  %2255 = vmatprep.subr.bf16.mxu0 %v2254_v18  ;;  %2264 = vmatprep.subr.bf16.mxu1 %v2254_v18 }
 0x11a   : > { %840 = vst [vmem:[%s2760_s12 + $0x38] sm:$0xff] %v3009_v19 }
 0x11b   : > { %2257 = vmatpush3.bf16.msra.mxu0 %v2254_v18  ;;  %2268 = vmatpush3.bf16.msra.mxu1 %v2254_v18  ;;  %839 = vst [vmem:[%s2760_s12 + $0x30] sm:$0xff] %v3011_v20  ;;  %v2258_v21 = vpack.c.bf16 %v3009_v19, %v3011_v20  ;;  %v1008_v59 = vpop.permute.xlu0 %1007  ;;  %v1013_v61 = vpop.permute.xlu1 %1012 }
 0x11d   : > { %2259 = vmatprep.subr.bf16.mxu0 %v2258_v21  ;;  %2265 = vmatprep.subr.bf16.mxu1 %v2258_v21 }
 0x11f   : > { %2261 = vmatpush3.bf16.msra.mxu0 %v2258_v21  ;;  %2269 = vmatpush3.bf16.msra.mxu1 %v2258_v21  ;;  %v3139_v62 = vpop.permute.xlu0 %1017  ;;  %v1023_v63 = vpop.permute.xlu1 %1022 }
 0x122   : > { %2199 = vmatmul.mubr.msk.f32.vlgmr.msra.gmra.mrb[8].mxu0 %vm1065_vm3, %v842_v22  ;;  %2223 = vmatmul.mubr.msk.f32.vlgmr.msra.gmra.mrb[8].mxu1 %vm1065_vm3, %v858_v23 }
 0x123   : > { %2201 = vmatprep.mubr.msk.f32.mxu0 %vm1065_vm3, %v843_v24  ;;  %2225 = vmatprep.mubr.msk.f32.mxu1 %vm1065_vm3, %v859_v25  ;;  %v3141_v0 = vpop.permute.xlu0 %1027  ;;  %v908_v1 = vpop.permute.xlu1 %907 }
 0x126   : > { %2202 = vmatmul.mubr.msk.f32.gmra.mrb[10].mxu0 %vm1065_vm3, %v844_v26  ;;  %2226 = vmatmul.mubr.msk.f32.gmra.mrb[10].mxu1 %vm1065_vm3, %v860_v27 }
 0x127   : > { %2204 = vmatprep.mubr.msk.f32.mxu0 %vm1065_vm3, %v845_v28  ;;  %2228 = vmatprep.mubr.msk.f32.mxu1 %vm1065_vm3, %v861_v29  ;;  %v913_v2 = vpop.permute.xlu0 %912  ;;  %v3143_v3 = vpop.permute.xlu1 %1032 }
 0x12a   : > { %2205 = vmatmul.mubr.msk.f32.gmra.mrb[12].mxu0 %vm1065_vm3, %v846_v30  ;;  %2229 = vmatmul.mubr.msk.f32.gmra.mrb[12].mxu1 %vm1065_vm3, %v862_v31 }
 0x12b   : > { %2207 = vmatprep.mubr.msk.f32.mxu0 %vm1065_vm3, %v847_v32  ;;  %2231 = vmatprep.mubr.msk.f32.mxu1 %vm1065_vm3, %v863_v33  ;;  %v918_v4 = vpop.permute.xlu0 %917  ;;  %v3145_v5 = vpop.permute.xlu1 %1037 }
 0x12e   : > { %2208 = vmatmul.mubr.msk.f32.gmra.mrb[14].mxu0 %vm1065_vm3, %v848_v34  ;;  %2232 = vmatmul.mubr.msk.f32.gmra.mrb[14].mxu1 %vm1065_vm3, %v864_v35 }
 0x12f   : > { %2210 = vmatprep.mubr.msk.f32.mxu0 %vm1065_vm3, %v849_v36  ;;  %2234 = vmatprep.mubr.msk.f32.mxu1 %vm1065_vm3, %v865_v37  ;;  %v923_v6 = vpop.permute.xlu0 %922  ;;  %v3147_v7 = vpop.permute.xlu1 %1042 }
 0x132   : > { %2211 = vmatmul.mubr.msk.f32.gmra.mrb[16].mxu0 %vm1065_vm3, %v850_v39  ;;  %2235 = vmatmul.mubr.msk.f32.gmra.mrb[16].mxu1 %vm1065_vm3, %v866_v40 }
 0x133   : > { %2213 = vmatprep.mubr.msk.f32.mxu0 %vm1065_vm3, %v851_v42  ;;  %2237 = vmatprep.mubr.msk.f32.mxu1 %vm1065_vm3, %v867_v43  ;;  %v3149_v8 = vpop.permute.xlu0 %927  ;;  %v3151_v9 = vpop.permute.xlu1 %1047 }
 0x136   : > { %2214 = vmatmul.mubr.msk.f32.gmra.mrb[18].mxu0 %vm1065_vm3, %v852_v44  ;;  %2238 = vmatmul.mubr.msk.f32.gmra.mrb[18].mxu1 %vm1065_vm3, %v868_v45 }
 0x137   : > { %2216 = vmatprep.mubr.msk.f32.mxu0 %vm1065_vm3, %v853_v46  ;;  %2240 = vmatprep.mubr.msk.f32.mxu1 %vm1065_vm3, %v869_v47  ;;  %v3153_v11 = vpop.permute.xlu0 %932  ;;  %v3155_v12 = vpop.permute.xlu1 %1052 }
 0x13a   : > { %2217 = vmatmul.mubr.msk.f32.gmra.mrb[20].mxu0 %vm1065_vm3, %v854_v48  ;;  %2241 = vmatmul.mubr.msk.f32.gmra.mrb[20].mxu1 %vm1065_vm3, %v870_v49 }
 0x13b   : > { %2219 = vmatprep.mubr.msk.f32.mxu0 %vm1065_vm3, %v855_v50  ;;  %2243 = vmatprep.mubr.msk.f32.mxu1 %vm1065_vm3, %v871_v51  ;;  %v3157_v14 = vpop.permute.xlu0 %937  ;;  %v3159_v15 = vpop.permute.xlu1 %1057 }
 0x13e   : > { %2220 = vmatmul.mubr.msk.f32.gmra.mrb[22].mxu0 %vm1065_vm3, %v856_v52  ;;  %2244 = vmatmul.mubr.msk.f32.gmra.mrb[22].mxu1 %vm1065_vm3, %v872_v53 }
 0x13f   : > { %v3161_v16 = vpop.permute.xlu0 %942  ;;  %v3163_v17 = vpop.permute.xlu1 %1062 }
 0x143   : > { %v3165_v18 = vpop.permute.xlu0 %947  ;;  %v3167_v21 = vpop.permute.xlu1 %1533 }
 0x147   : > { %v3169_v28 = vpop.permute.xlu0 %1538  ;;  %v3171_v37 = vpop.permute.xlu1 %952 }
 0x14b   : > { %v3173_v50 = vpop.permute.xlu0 %1543 }
 0x1f5   : > { %v2200_v22 = vpop.f32.mrb[8].mxu0  ;;  %v2224_v23 = vpop.f32.mrb[8].mxu1 }
 0x1f6   : > { %v1314_v24 = vadd.f32 %v2224_v23, %v993_v55  ;;  %v1228_v25 = vpop.f32.mrb[9].mxu0  ;;  %v1308_v26 = vpop.f32.mrb[9].mxu1  ;;  %v1234_v39 = vadd.f32 %v2200_v22, %v913_v2 }
 0x1f7   : > { %v1309_v27 = vadd.f32 %v1308_v26, %v988_v54  ;;  %v1229_v42 = vadd.f32 %v1228_v25, %v908_v1 }
 0x1f8   : > { %v2072_v29 = vmul.f32 -1.442695, %v1314_v24 }
 0x1f9   : > { %v2071_v30 = vmul.f32 -1.442695, %v1309_v27  ;;  %v2203_v31 = vpop.f32.mrb[10].mxu0  ;;  %v2227_v32 = vpop.f32.mrb[10].mxu1 }
 0x1fa   : > { %2354 = vpow2.f32 %v2072_v29  ;;  %v1324_v33 = vadd.f32 %v2227_v32, %v1003_v58  ;;  %v1238_v34 = vpop.f32.mrb[11].mxu0  ;;  %v1318_v35 = vpop.f32.mrb[11].mxu1  ;;  %v1244_v51 = vadd.f32 %v2203_v31, %v923_v6 }
 0x1fb   : > { %2356 = vpow2.f32 %v2071_v30  ;;  %v1319_v36 = vadd.f32 %v1318_v35, %v998_v56  ;;  %v1239_v53 = vadd.f32 %v1238_v34, %v918_v4  ;;  %v3186_v32 = vpop.permute.xlu0 %1548 }
 0x1fc   : > { %v2074_v40 = vmul.f32 -1.442695, %v1324_v33 }
 0x1fd   : > { %v2073_v43 = vmul.f32 -1.442695, %v1319_v36  ;;  %v2206_v44 = vpop.f32.mrb[12].mxu0  ;;  %v2230_v45 = vpop.f32.mrb[12].mxu1 }
 0x1fe   : > { %2358 = vpow2.f32 %v2074_v40  ;;  %v1334_v46 = vadd.f32 %v2230_v45, %v1013_v61  ;;  %v1248_v47 = vpop.f32.mrb[13].mxu0  ;;  %v1328_v48 = vpop.f32.mrb[13].mxu1 }
 0x1ff   : > { %2360 = vpow2.f32 %v2073_v43  ;;  %v1329_v49 = vadd.f32 %v1328_v48, %v1008_v59  ;;  %v3178_v59 = vpop.permute.xlu1 %957 }
 0x200   : > { %2362 = vtanh.f32 %v1234_v39  ;;  %v2076_v52 = vmul.f32 -1.442695, %v1334_v46 }
 0x201   : > { %2364 = vtanh.f32 %v1229_v42  ;;  %v2075_v54 = vmul.f32 -1.442695, %v1329_v49  ;;  %v2209_v55 = vpop.f32.mrb[14].mxu0  ;;  %v2233_v56 = vpop.f32.mrb[14].mxu1 }
 0x202   : > { %2366 = vpow2.f32 %v2076_v52  ;;  %v1344_v58 = vadd.f32 %v2233_v56, %v1023_v63  ;;  %v3175_v1 = vpop.f32.mrb[15].mxu0  ;;  %v1338_v2 = vpop.f32.mrb[15].mxu1  ;;  %v1254_v63 = vadd.f32 %v2206_v44, %v3153_v11 }
 0x203   : > { %2368 = vpow2.f32 %v2075_v54  ;;  %v1339_v61 = vadd.f32 %v1338_v2, %v3139_v62  ;;  %v3194_v48 = vpop.permute.xlu1 %962 }
 0x204   : > { %v2355_v22 = vpop.eup %2354  ;;  %2370 = vtanh.f32 %v1244_v51  ;;  %v2078_v23 = vmul.f32 -1.442695, %v1344_v58 }
 0x205   : > { %v2357_v6 = vpop.eup %2356  ;;  %v1452_v24 = vadd.f32 1.0, %v2355_v22  ;;  %2372 = vtanh.f32 %v1239_v53  ;;  %v2077_v4 = vmul.f32 -1.442695, %v1339_v61  ;;  %v3180_v25 = vpop.f32.mrb[16].mxu0 }
 0x206   : > { %v2236_v26 = vpop.f32.mrb[16].mxu1  ;;  %v1451_v27 = vadd.f32 1.0, %v2357_v6  ;;  %2374 = vpow2.f32 %v2078_v23  ;;  %v3184_v30 = vpop.f32.mrb[17].mxu0 }
 0x207   : > { %v1354_v29 = vadd.f32 %v2236_v26, %v3143_v3  ;;  %v1348_v62 = vpop.f32.mrb[17].mxu1  ;;  %2376 = vrcp.f32 %v1452_v24  ;;  %v1249_v3 = vadd.f32 %v1248_v47, %v3149_v8  ;;  %v1264_v47 = vadd.f32 %v2209_v55, %v3161_v16  ;;  %v3203_v23 = vpop.permute.xlu0 %1553 }
 0x208   : > { %v2359_v31 = vpop.eup %2358  ;;  %2378 = vrcp.f32 %v1451_v27  ;;  %v1349_v36 = vadd.f32 %v1348_v62, %v3141_v0  ;;  %v1259_v26 = vadd.f32 %v3175_v1, %v3157_v14  ;;  %v1274_v14 = vadd.f32 %v3180_v25, %v3171_v37 }
 0x209   : > { %v2361_v33 = vpop.eup %2360  ;;  %v1454_v34 = vadd.f32 1.0, %v2359_v31  ;;  %2380 = vpow2.f32 %v2077_v4  ;;  %v2080_v35 = vmul.f32 -1.442695, %v1354_v29  ;;  %v3189_v39 = vpop.f32.mrb[18].mxu0 }
 0x20a   : > { %v2239_v11 = vpop.f32.mrb[18].mxu1  ;;  %v2363_v40 = vpop.eup %2362  ;;  %v1453_v42 = vadd.f32 1.0, %v2361_v33  ;;  %2382 = vtanh.f32 %v1254_v63  ;;  %v2079_v52 = vmul.f32 -1.442695, %v1349_v36 }
 0x20b   : > { %v3192_v43 = vpop.f32.mrb[19].mxu0  ;;  %v1358_v44 = vpop.f32.mrb[19].mxu1  ;;  %2384 = vrcp.f32 %v1454_v34  ;;  %v1364_v49 = vadd.f32 %v2239_v11, %v3147_v7 }
 0x20c   : > { %v2365_v45 = vpop.eup %2364  ;;  %2386 = vrcp.f32 %v1453_v42  ;;  %v1359_v22 = vadd.f32 %v1358_v44, %v3145_v5  ;;  %v3212_v33 = vpop.permute.xlu1 %967 }
 0x20d   : > { %v2367_v46 = vpop.eup %2366  ;;  %2388 = vpow2.f32 %v2080_v35  ;;  %v3197_v53 = vpop.f32.mrb[20].mxu0  ;;  %v2082_v6 = vmul.f32 -1.442695, %v1364_v49 }
 0x20e   : > { %v2369_v0 = vpop.eup %2368  ;;  %v1456_v51 = vadd.f32 1.0, %v2367_v46  ;;  %v2242_v54 = vpop.f32.mrb[20].mxu1  ;;  %2390 = vtanh.f32 %v1249_v3  ;;  %v2081_v1 = vmul.f32 -1.442695, %v1359_v22 }
 0x20f   : > { %v2371_v56 = vpop.eup %2370  ;;  %v1455_v8 = vadd.f32 1.0, %v2369_v0  ;;  %v3200_v58 = vpop.f32.mrb[21].mxu0  ;;  %v1374_v16 = vadd.f32 %v2242_v54, %v3155_v12 }
 0x210   : > { %v1368_v2 = vpop.f32.mrb[21].mxu1  ;;  %v2373_v61 = vpop.eup %2372  ;;  %2392 = vrcp.f32 %v1456_v51 }
 0x211   : > { %v2375_v7 = vpop.eup %2374  ;;  %2394 = vrcp.f32 %v1455_v8  ;;  %v3208_v55 = vpop.f32.mrb[22].mxu0  ;;  %v1369_v11 = vadd.f32 %v1368_v2, %v3151_v9  ;;  %v2084_v3 = vmul.f32 -1.442695, %v1374_v16  ;;  %v1269_v8 = vadd.f32 %v3184_v30, %v3165_v18 }
 0x212   : > { %v2377_v24 = vpop.eup %2376  ;;  %v1458_v4 = vadd.f32 1.0, %v2375_v7  ;;  %2396 = vpow2.f32 %v2079_v52  ;;  %v2245_v27 = vpop.f32.mrb[22].mxu1 }
 0x213   : > { %v2379_v63 = vpop.eup %2378  ;;  %v1500_v29 = vmul.f32 %v2377_v24, %v2363_v40  ;;  %2398 = vtanh.f32 %v1264_v47  ;;  %v3210_v5 = vpop.f32.mrb[23].mxu0  ;;  %v1384_v25 = vadd.f32 %v2245_v27, %v3163_v17  ;;  %v2083_v52 = vmul.f32 -1.442695, %v1369_v11 }
 0x214   : > { %v1378_v62 = vpop.f32.mrb[23].mxu1  ;;  %v2381_v31 = vpop.eup %2380  ;;  %v1499_v34 = vmul.f32 %v2379_v63, %v2365_v45  ;;  %2400 = vrcp.f32 %v1458_v4 }
 0x215   : > { %v2383_v35 = vpop.eup %2382  ;;  %v1612_v12 = vmul.f32 %v3169_v28, %v1500_v29  ;;  %v1457_v36 = vadd.f32 1.0, %v2381_v31  ;;  %2402 = vpow2.f32 %v2082_v6  ;;  %v1559_v49 = vpop.permute.xlu0 %1558  ;;  %v1379_v2 = vadd.f32 %v1378_v62, %v3159_v15 }
 0x216   : > { %v2385_v40 = vpop.eup %2384  ;;  %v1611_v42 = vmul.f32 %v3167_v21, %v1499_v34  ;;  %2404 = vtanh.f32 %v1259_v26  ;;  %v973_v54 = vpop.permute.xlu1 %972  ;;  %v2086_v6 = vmul.f32 -1.442695, %v1384_v25 }
 0x217   : > { %v2387_v44 = vpop.eup %2386  ;;  %v1502_v46 = vmul.f32 %v2385_v40, %v2371_v56  ;;  %2406 = vrcp.f32 %v1457_v36  ;;  %v2085_v63 = vmul.f32 -1.442695, %v1379_v2 }
 0x218   : > { %v2389_v45 = vpop.eup %2388  ;;  %v1627_v0 = vadd.f32 %v1612_v12, %v1611_v42  ;;  %v1501_v37 = vmul.f32 %v2387_v44, %v2373_v61  ;;  %2408 = vpow2.f32 %v2081_v1 }
 0x219   : > { %v2391_v28 = vpop.eup %2390  ;;  %2410 = vtanh.f32 %v1274_v14  ;;  %v1460_v51 = vadd.f32 1.0, %v2389_v45  ;;  %v1614_v17 = vmul.f32 %v3186_v32, %v1502_v46  ;;  %v1564_v18 = vpop.permute.xlu0 %1563  ;;  %v1279_v32 = vadd.f32 %v3192_v43, %v3178_v59 }
 0x21a   : > { %v2393_v9 = vpop.eup %2392  ;;  %v1613_v21 = vmul.f32 %v3173_v50, %v1501_v37  ;;  %2412 = vpow2.f32 %v2084_v3  ;;  %v1284_v50 = vadd.f32 %v3189_v39, %v3194_v48  ;;  %v978_v62 = vpop.permute.xlu1 %977  ;;  %v1289_v3 = vadd.f32 %v3200_v58, %v3212_v33 }
 0x21b   : > { %v2395_v56 = vpop.eup %2394  ;;  %v1504_v47 = vmul.f32 %v2393_v9, %v2383_v35  ;;  %2414 = vrcp.f32 %v1460_v51  ;;  %v1294_v35 = vadd.f32 %v3197_v53, %v973_v54  ;;  %v1299_v33 = vadd.f32 %v3210_v5, %v978_v62 }
 0x21c   : > { %v2397_v61 = vpop.eup %2396  ;;  %v1628_v22 = vadd.f32 %v1627_v0, %v1613_v21  ;;  %v1503_v7 = vmul.f32 %v2395_v56, %v2391_v28  ;;  %2416 = vpow2.f32 %v2083_v52 }
 0x21d   : > { %v2399_v24 = vpop.eup %2398  ;;  %v1459_v4 = vadd.f32 1.0, %v2397_v61  ;;  %2418 = vtanh.f32 %v1269_v8  ;;  %v1616_v31 = vmul.f32 %v1559_v49, %v1504_v47  ;;  %v1569_v59 = vpop.permute.xlu0 %1568 }
 0x21e   : > { %v2401_v26 = vpop.eup %2400  ;;  %v1615_v30 = vmul.f32 %v3203_v23, %v1503_v7  ;;  %v1629_v16 = vadd.f32 %v1628_v22, %v1614_v17  ;;  %v983_v44 = vpop.permute.xlu1 %982 }
 0x21f   : > { %v2403_v27 = vpop.eup %2402  ;;  %v1506_v15 = vmul.f32 %v2401_v26, %v2399_v24  ;;  %2420 = vrcp.f32 %v1459_v4  ;;  %v1304_v28 = vadd.f32 %v3208_v55, %v983_v44 }
 0x220   : > { %v2405_v29 = vpop.eup %2404  ;;  %v1630_v34 = vadd.f32 %v1629_v16, %v1615_v30  ;;  %v1462_v14 = vadd.f32 1.0, %v2403_v27  ;;  %2422 = vpow2.f32 %v2086_v6 }
 0x221   : > { %v2407_v39 = vpop.eup %2406  ;;  %2424 = vtanh.f32 %v1284_v50  ;;  %v1618_v46 = vmul.f32 %v1569_v59, %v1506_v15  ;;  %v1574_v9 = vpop.permute.xlu0 %1573 }
 0x222   : > { %v2409_v48 = vpop.eup %2408  ;;  %v1505_v1 = vmul.f32 %v2407_v39, %v2405_v29  ;;  %v1631_v23 = vadd.f32 %v1630_v34, %v1616_v31  ;;  %2426 = vrcp.f32 %v1462_v14  ;;  %v1579_v56 = vpop.permute.xlu1 %1578 }
 0x223   : > { %v2411_v12 = vpop.eup %2410  ;;  %v1461_v36 = vadd.f32 1.0, %v2409_v48  ;;  %2428 = vpow2.f32 %v2085_v63 }
 0x224   : > { %v2413_v11 = vpop.eup %2412  ;;  %v1617_v43 = vmul.f32 %v1564_v18, %v1505_v1  ;;  %2430 = vtanh.f32 %v1279_v32 }
 0x225   : > { %v2415_v40 = vpop.eup %2414  ;;  %2432 = vrcp.f32 %v1461_v36  ;;  %v1464_v42 = vadd.f32 1.0, %v2413_v11  ;;  %v1584_v4 = vpop.permute.xlu0 %1583 }
 0x226   : > { %v1632_v45 = vadd.f32 %v1631_v23, %v1617_v43  ;;  %v1508_v49 = vmul.f32 %v2415_v40, %v2411_v12  ;;  %2434 = vtanh.f32 %v1294_v35  ;;  %v2417_v0 = vpop.eup %2416  ;;  %v1589_v5 = vpop.permute.xlu1 %1588 }
 0x227   : > { %2436 = vrcp.f32 %v1464_v42  ;;  %v2419_v53 = vpop.eup %2418  ;;  %v1463_v25 = vadd.f32 1.0, %v2417_v0 }
 0x228   : > { %v1633_v37 = vadd.f32 %v1632_v45, %v1618_v46  ;;  %2438 = vtanh.f32 %v1289_v3  ;;  %v1620_v22 = vmul.f32 %v1579_v56, %v1508_v49  ;;  %v1654_v46 = vlaneseq }
 0x229   : > { %v2421_v51 = vpop.eup %2420  ;;  %2440 = vrcp.f32 %v1463_v25  ;;  %v1594_v31 = vpop.permute.xlu0 %1593 }
 0x22a   : > { %v2423_v52 = vpop.eup %2422  ;;  %v1507_v54 = vmul.f32 %v2421_v51, %v2419_v53  ;;  %2442 = vtanh.f32 %v1304_v28  ;;  %v1599_v48 = vpop.permute.xlu1 %1598  ;;  %v1655_v0 = vshrl.u32 %v1654_v46, 7 }
 0x22b   : > { %v2425_v21 = vpop.eup %2424  ;;  %v1466_v58 = vadd.f32 1.0, %v2423_v52 }
 0x22c   : > { %v2427_v8 = vpop.eup %2426  ;;  %v1619_v47 = vmul.f32 %v1574_v9, %v1507_v54  ;;  %v3235_v25 = vsub.s32 0, %v1655_v0 }
 0x22d   : > { %v2429_v2 = vpop.eup %2428  ;;  %v1510_v61 = vmul.f32 %v2427_v8, %v2425_v21  ;;  %2444 = vrcp.f32 %v1466_v58  ;;  %v1604_v43 = vpop.permute.xlu0 %1603  ;;  %v1660_v58 = vld [vmem:[#allocation2] sm:$0x1] }
 0x22e   : > { %v2431_v17 = vpop.eup %2430  ;;  %v1634_v55 = vadd.f32 %v1633_v37, %v1619_v47  ;;  %v1465_v7 = vadd.f32 1.0, %v2429_v2  ;;  %2446 = vtanh.f32 %v1299_v33  ;;  %v1609_v42 = vpop.permute.xlu1 %1608 }
 0x22f   : > { %v2433_v6 = vpop.eup %2432  ;;  %v1622_v32 = vmul.f32 %v1589_v5, %v1510_v61 }
 0x230   : > { %v2435_v24 = vpop.eup %2434  ;;  %v1509_v50 = vmul.f32 %v2433_v6, %v2431_v17  ;;  %v1635_v26 = vadd.f32 %v1634_v55, %v1620_v22  ;;  %2448 = vrcp.f32 %v1465_v7 }
 0x231   : > { %v2437_v18 = vpop.eup %2436  ;;  %v1652_v51 = vpop.permute.xlu0 %1651 }
 0x232   : > { %v1621_v30 = vmul.f32 %v1584_v4, %v1509_v50  ;;  %v1512_v16 = vmul.f32 %v2437_v18, %v2435_v24  ;;  %v2439_v27 = vpop.eup %2438  ;;  %v1657_v9 = vrot.slane %v1652_v51, %v3235_v25 }
 0x233   : > { %v2441_v15 = vpop.eup %2440 }
 0x234   : > { %v1636_v63 = vadd.f32 %v1635_v26, %v1621_v30  ;;  %v1511_v29 = vmul.f32 %v2441_v15, %v2439_v27  ;;  %v2443_v62 = vpop.eup %2442  ;;  %v1624_v35 = vmul.f32 %v1599_v48, %v1512_v16 }
 0x236   : > { %v1637_v34 = vadd.f32 %v1636_v63, %v1622_v32  ;;  %v1623_v39 = vmul.f32 %v1594_v31, %v1511_v29  ;;  %v1688_v32 = vld [vmem:[#allocation4 + $0x10] sm:$0xff]  ;;  %v1689_v29 = vld [vmem:[#allocation4 + $0x18] sm:$0xff] }
 0x237   : > { %v2445_v14 = vpop.eup %2444 }
 0x238   : > { %v1514_v1 = vmul.f32 %v2445_v14, %v2443_v62  ;;  %v2447_v23 = vpop.eup %2446  ;;  %v1638_v12 = vadd.f32 %v1637_v34, %v1623_v39  ;;  %v1690_v14 = vld [vmem:[#allocation4 + $0x20] sm:$0xff] }
 0x23a   : > { %v2449_v36 = vpop.eup %2448  ;;  %v1639_v59 = vadd.f32 %v1638_v12, %v1624_v35  ;;  %v1626_v3 = vmul.f32 %v1609_v42, %v1514_v1  ;;  %v1693_v42 = vld [vmem:[#allocation4 + $0x38] sm:$0xff] }
 0x23b   : > { %v1513_v11 = vmul.f32 %v2449_v36, %v2447_v23  ;;  %v1691_v23 = vld [vmem:[#allocation4 + $0x28] sm:$0xff] }
 0x23d   : > { %v1625_v40 = vmul.f32 %v1604_v43, %v1513_v11  ;;  %v1692_v11 = vld [vmem:[#allocation4 + $0x30] sm:$0xff] }
 0x23f   : > { %v1640_v44 = vadd.f32 %v1639_v59, %v1625_v40 }
 0x241   : > { %v1641_v45 = vadd.f32 %v1640_v44, %v1626_v3 }
 0x243   : > { %v1642_v49 = vrot.slane %v1641_v45, 4 }
 0x245   : > { %v1643_v53 = vadd.f32 %v1642_v49, %v1641_v45 }
 0x247   : > { %v1644_v37 = vrot.slane %v1643_v53, 2 }
 0x249   : > { %v1645_v28 = vadd.f32 %v1644_v37, %v1643_v53 }
 0x24b   : > { %v1646_v52 = vrot.slane %v1645_v28, 1 }
 0x24d   : > { %v1647_v54 = vadd.f32 %v1646_v52, %v1645_v28 }
 0x24f   : > { %v1658_v21 = vadd.f32 %v1657_v9, %v1647_v54 }
 0x251   : > { %1661 = vmax.xlane.f32.xlu1 %v1658_v21  ;;  %1659 = vst [vmem:[%s465_s9] sm:$0x1] %v1658_v21 }
 0x2de   : > { %v1662_v33 = vpop.xlane.xlu1 %1661 }
 0x2df   : > { %v1663_v8 = vmax.f32 %v1660_v58, %v1662_v33 }
 0x2e1   : > { %v1664_v56 = vsub.f32 %v1660_v58, %v1663_v8  ;;  %1749 = vst.msk [vmem:[#allocation2] sm:$0x1] %vm1684_vm4, %v1663_v8  ;;  %1669 = vperm.xlu0 %2352, %v1663_v8   ;;  %v1778_v8 = vld [vmem:[%s3396_s8] sm:$0xff] (!%p2087_p1) }
 0x360   : > { %v1670_v47 = vpop.permute.xlu0 %1669 }
 0x361   : > { %v1675_v2 = vrot.slane %v1670_v47, %v3235_v25  ;;  %v1780_v47 = vld [vmem:[%s3396_s8 + $0x10] sm:$0xff] (!%p2087_p1) }
 0x363   : > { %v1676_v61 = vsub.f32 %v1658_v21, %v1675_v2  ;;  %v1781_v2 = vld [vmem:[%s3396_s8 + $0x18] sm:$0xff] (!%p2087_p1) }
 0x365   : > { %v1677_v17 = vmul.f32 1.442695, %v1676_v61 }
 0x367   : > { %2450 = vpow2.f32 %v1677_v17 }
 0x371   : > { %v2451_v22 = vpop.eup %2450 }
 0x372   : > { %1681 = vadd.xlane.f32.xlu0 %v2451_v22  ;;  %v1708_v55 = vmul.f32 %v2451_v22, %v2981_v41  ;;  %v1709_v7 = vmul.f32 %v2451_v22, %v2979_v38  ;;  %v1710_v6 = vmul.f32 %v2451_v22, %v2991_v60  ;;  %v1711_v24 = vmul.f32 %v2451_v22, %v2989_v57  ;;  %v1679_v60 = vld [vmem:[#allocation3] sm:$0x1]  ;;  %v1686_v57 = vld [vmem:[#allocation4] sm:$0xff] }
 0x373   : > { %v1712_v4 = vmul.f32 %v2451_v22, %v3001_v13  ;;  %v1713_v50 = vmul.f32 %v2451_v22, %v2999_v10  ;;  %v1714_v26 = vmul.f32 %v2451_v22, %v3011_v20  ;;  %v1715_v41 = vmul.f32 %v2451_v22, %v3009_v19  ;;  %v1687_v13 = vld [vmem:[#allocation4 + $0x8] sm:$0xff] }
 0x374   : > { %1716 = vadd.xlane.f32.xlu1 %v1708_v55  ;;  %v1665_v38 = vmul.f32 1.442695, %v1664_v56  ;;  %v1779_v56 = vld [vmem:[%s3396_s8 + $0x8] sm:$0xff] (!%p2087_p1) }
 0x376   : > { %1718 = vadd.xlane.f32.xlu0 %v1709_v7  ;;  %2452 = vpow2.f32 %v1665_v38 }
 0x378   : > { %1720 = vadd.xlane.f32.xlu1 %v1710_v6 }
 0x37a   : > { %1722 = vadd.xlane.f32.xlu0 %v1711_v24  ;;  %v1782_v24 = vld [vmem:[%s3396_s8 + $0x20] sm:$0xff] (!%p2087_p1) }
 0x37c   : > { %1724 = vadd.xlane.f32.xlu1 %v1712_v4 }
 0x37e   : > { %1726 = vadd.xlane.f32.xlu0 %v1713_v50 }
 0x380   : > { %1728 = vadd.xlane.f32.xlu1 %v1714_v26  ;;  %v2453_v18 = vpop.eup %2452 }
 0x381   : > { %v1698_v5 = vrot.slane %v2453_v18, %v3235_v25  ;;  %v1680_v30 = vmul.f32 %v2453_v18, %v1679_v60  ;;  %v1783_v60 = vld [vmem:[%s3396_s8 + $0x28] sm:$0xff] (!%p2087_p1) }
 0x382   : > { %1730 = vadd.xlane.f32.xlu0 %v1715_v41 }
 0x383   : > { %v1700_v15 = vmul.f32 %v1698_v5, %v1686_v57  ;;  %v1701_v19 = vmul.f32 %v1698_v5, %v1687_v13  ;;  %v1702_v31 = vmul.f32 %v1698_v5, %v1688_v32  ;;  %v1703_v48 = vmul.f32 %v1698_v5, %v1689_v29  ;;  %v1784_v13 = vld [vmem:[%s3396_s8 + $0x30] sm:$0xff] (!%p2087_p1) }
 0x384   : > { %v1704_v12 = vmul.f32 %v1698_v5, %v1690_v14  ;;  %v1705_v43 = vmul.f32 %v1698_v5, %v1691_v23  ;;  %v1706_v44 = vmul.f32 %v1698_v5, %v1692_v11  ;;  %v1707_v49 = vmul.f32 %v1698_v5, %v1693_v42 }
 0x3ff   : > { %v1682_v16 = vpop.xlane.xlu0 %1681 }
 0x400   : > { %v1683_v27 = vadd.f32 %v1682_v16, %v1680_v30 }
 0x401   : > { %v1717_v10 = vpop.xlane.xlu1 %1716 }
 0x402   : > { %1685 = vst.msk [vmem:[#allocation3] sm:$0x1] %vm1684_vm4, %v1683_v27  ;;  %v1732_v20 = vadd.f32 %v1717_v10, %v1700_v15 }
 0x403   : > { %v1719_v63 = vpop.xlane.xlu0 %1718 }
 0x404   : > { %1741 = vst.msk [vmem:[#allocation4] sm:$0xff] %vm1740_vm5, %v1732_v20  ;;  %v1733_v62 = vadd.f32 %v1719_v63, %v1701_v19  ;;  %v1785_v20 = vld [vmem:[%s3396_s8 + $0x38] sm:$0xff] (!%p2087_p1) }
 0x405   : > { %v1721_v34 = vpop.xlane.xlu1 %1720 }
 0x406   : > { %1742 = vst.msk [vmem:[#allocation4 + $0x8] sm:$0xff] %vm1740_vm5, %v1733_v62  ;;  %v1734_v39 = vadd.f32 %v1721_v34, %v1702_v31 }
 0x407   : > { %v1723_v1 = vpop.xlane.xlu0 %1722 }
 0x408   : > { %1743 = vst.msk [vmem:[#allocation4 + $0x10] sm:$0xff] %vm1740_vm5, %v1734_v39  ;;  %v1735_v35 = vadd.f32 %v1723_v1, %v1703_v48 }
 0x409   : > { %v1725_v36 = vpop.xlane.xlu1 %1724  ;;  %v1754_v37 = vld [vmem:[#allocation3] sm:$0x1] (!%p2087_p1) }
 0x40a   : > { %1744 = vst.msk [vmem:[#allocation4 + $0x18] sm:$0xff] %vm1740_vm5, %v1735_v35  ;;  %v1736_v59 = vadd.f32 %v1725_v36, %v1704_v12  ;;  %2454 = vrcp.f32 (!%p2087_p1), %v1754_v37 }
 0x40b   : > { %v1727_v40 = vpop.xlane.xlu0 %1726  ;;  %v1756_v28 = vld [vmem:[#allocation4] sm:$0xff] (!%p2087_p1) }
 0x40c   : > { %1745 = vst.msk [vmem:[#allocation4 + $0x20] sm:$0xff] %vm1740_vm5, %v1736_v59  ;;  %v1737_v3 = vadd.f32 %v1727_v40, %v1705_v43  ;;  %1753 = sbr.rel (%p2087_p1) target bundleno = 1107 (0x453), region = 68  ;;  %v1815_v40 = vld [vmem:[#allocation6] sm:$0x1] (!%p2087_p1) }
 0x40d   : > { %v1729_v46 = vpop.xlane.xlu1 %1728  ;;  %v1757_v52 = vld [vmem:[#allocation4 + $0x8] sm:$0xff] (!%p2087_p1) }
 0x40e   : > { %1746 = vst.msk [vmem:[#allocation4 + $0x28] sm:$0xff] %vm1740_vm5, %v1737_v3  ;;  %v1738_v45 = vadd.f32 %v1729_v46, %v1706_v44 }
 0x40f   : > { %v1731_v0 = vpop.xlane.xlu0 %1730  ;;  %v1758_v9 = vld [vmem:[#allocation4 + $0x10] sm:$0xff] (!%p2087_p1) }
 0x410   : > { %1747 = vst.msk [vmem:[#allocation4 + $0x30] sm:$0xff] %vm1740_vm5, %v1738_v45  ;;  %v1739_v53 = vadd.f32 %v1731_v0, %v1707_v49 }
 0x411   : > { %v1759_v54 = vld [vmem:[#allocation4 + $0x18] sm:$0xff] (!%p2087_p1) }
 0x412   : > { %1748 = vst.msk [vmem:[#allocation4 + $0x38] sm:$0xff] %vm1740_vm5, %v1739_v53 }
 0x413   : > { %v1760_v21 = vld [vmem:[#allocation4 + $0x20] sm:$0xff] }
 0x414   : > { %v2455_v51 = vpop.eup %2454 }
 0x415   : > { %v1761_v58 = vld [vmem:[#allocation4 + $0x28] sm:$0xff]  ;;  %v1768_v33 = vrot.slane %v2455_v51, %v3235_v25 }
 0x417   : > { %v1762_v61 = vld [vmem:[#allocation4 + $0x30] sm:$0xff]  ;;  %v1770_v17 = vmul.f32 %v1768_v33, %v1756_v28  ;;  %v1771_v22 = vmul.f32 %v1768_v33, %v1757_v52  ;;  %v1772_v25 = vmul.f32 %v1768_v33, %v1758_v9  ;;  %v1773_v55 = vmul.f32 %v1768_v33, %v1759_v54 }
 0x418   : > { %v1774_v7 = vmul.f32 %v1768_v33, %v1760_v21  ;;  %v1775_v6 = vmul.f32 %v1768_v33, %v1761_v58  ;;  %v1776_v18 = vmul.f32 %v1768_v33, %v1762_v61 }
 0x419   : > { %v1786_v4 = vmul.f32 %v1778_v8, %v1770_v17  ;;  %v1787_v50 = vmul.f32 %v1779_v56, %v1771_v22  ;;  %v1788_v26 = vmul.f32 %v1780_v47, %v1772_v25  ;;  %v1789_v41 = vmul.f32 %v1781_v2, %v1773_v55  ;;  %v1763_v38 = vld [vmem:[#allocation4 + $0x38] sm:$0xff] }
 0x41a   : > { %v1790_v5 = vmul.f32 %v1782_v24, %v1774_v7  ;;  %v1777_v15 = vmul.f32 %v1768_v33, %v1763_v38  ;;  %v1791_v10 = vmul.f32 %v1783_v60, %v1775_v6  ;;  %v1792_v63 = vmul.f32 %v1784_v13, %v1776_v18 }
 0x41b   : > { %v1794_v57 = vsel %vm1740_vm5, %v1786_v4, 0.0  ;;  %v1795_v30 = vsel %vm1740_vm5, %v1787_v50, 0.0  ;;  %v1797_v16 = vsel %vm1740_vm5, %v1788_v26, 0.0  ;;  %v1799_v32 = vsel %vm1740_vm5, %v1789_v41, 0.0 }
 0x41c   : > { %v1796_v27 = vadd.f32 %v1795_v30, %v1794_v57  ;;  %v1801_v29 = vsel %vm1740_vm5, %v1790_v5, 0.0  ;;  %v1793_v31 = vmul.f32 %v1785_v20, %v1777_v15  ;;  %v1803_v34 = vsel %vm1740_vm5, %v1791_v10, 0.0 }
 0x41d   : > { %v1805_v39 = vsel %vm1740_vm5, %v1792_v63, 0.0 }
 0x41e   : > { %v1798_v19 = vadd.f32 %v1797_v16, %v1796_v27  ;;  %v1807_v1 = vsel %vm1740_vm5, %v1793_v31, 0.0 }
 0x420   : > { %v1800_v62 = vadd.f32 %v1799_v32, %v1798_v19 }
 0x422   : > { %v1802_v14 = vadd.f32 %v1801_v29, %v1800_v62 }
 0x424   : > { %v1804_v48 = vadd.f32 %v1803_v34, %v1802_v14 }
 0x426   : > { %v1806_v23 = vadd.f32 %v1805_v39, %v1804_v48 }
 0x428   : > { %v1808_v35 = vadd.f32 %v1807_v1, %v1806_v23 }
 0x42a   : > { %v1809_v12 = vrot.slane %v1808_v35, 4 }
 0x42c   : > { %v1810_v36 = vadd.f32 %v1809_v12, %v1808_v35 }
 0x42e   : > { %v1811_v11 = vrot.slane %v1810_v36, 2 }
 0x430   : > { %v1812_v59 = vadd.f32 %v1811_v11, %v1810_v36 }
 0x432   : > { %v1813_v43 = vrot.slane %v1812_v59, 1 }
 0x434   : > { %v1814_v42 = vadd.f32 %v1813_v43, %v1812_v59 }
 0x436   : > { %v1816_v3 = vadd.f32 %v1815_v40, %v1814_v42 }
 0x438   : > { %v2088_v44 = vmul.f32 -1.442695, %v1816_v3 }
 0x43a   : > { %2456 = vpow2.f32 %v2088_v44 }
 0x444   : > { %v2457_v46 = vpop.eup %2456 }
 0x445   : > { %v1820_v45 = vadd.f32 1.0, %v2457_v46 }
 0x447   : > { %2458 = vrcp.f32 %v1820_v45 }
 0x451   : > { %v2459_v49 = vpop.eup %2458 }
 0x452   : > { %1823 = vst.msk [vmem:[%s491_s16] sm:$0x1] %vm1684_vm4, %v2459_v49 }
 0x453 PF: > { %s2090_s30 = sshll.u32 %s2574_s29, 1  ;;  %s1850_s19 = sshll.u32 %s465_s9, 4  ;;  %s3304_s19 = int_to_ptr.vmem [resolvable:$true] %s1850_s19 }
 0x454   : > { %s1846_s15 = sadd.s32 %s2570_s28, %s2090_s30  ;;  %s1828_s14 = scalar_lea.sflag [#allocation8], %s2739_s24 }
 0x455   : > { %s2091_s23 = sshll.u32 %s1846_s15, 4  ;;  %s2460_s13 = scalar_lea.vmem %s3304_s19, 16 }
 0x456   : > { %s1848_s16 = scalar_lea.hbm %s3398_s11, %s2091_s23  ;;  %p2461_p2 = scmp.ne.s32.totalorder %s3304_s19, %s2460_s13 }
 0x457   : > { %s2591_s17 = smov [#allocation7]  }
 0x458   : > { %p2462_p4 = pnand %p2461_p2, %p2718_p3  ;;  %s2464_s20 = sshll.u32 %s2591_s17, 4  ;;  %s2465_s20 = int_to_ptr.vmem [resolvable:$false] %s2464_s20 }
 0x459   : > { %s2466_s9 = scalar_lea.vmem %s2465_s20, 32  ;;  %p2467_p6 = scmp.lt.s32.totalorder %s3304_s19, %s2465_s20 }
 0x45a   : > { %p2463_p5 = pneg %p2462_p4  ;;  %p2468_p7 = scmp.lt.s32.totalorder %s2466_s9, %s2460_s13 }
 0x45c   : > { %p2469_p9 = por %p2468_p7, %p2467_p6 }
 0x45e   : > { %p2470_p10 = pnand %p2469_p9, %p2463_p5 }
 0x460   : > { %2473 = shalt.err (!%p2470_p10)
}
 0x461   : > { %s2474_s21 = scalar_lea.hbm %s1848_s16, 16  ;;  %s2478_s7 = scalar_lea.hbm %s3398_s11, 64 }
 0x462   : > { %p2475_p11 = scmp.ne.s32.totalorder %s1848_s16, %s2474_s21  ;;  %p2479_p0 = scmp.lt.u32.totalorder %s1848_s16, %s3398_s11 }
 0x463   : > { %p2480_p1 = scmp.lt.u32.totalorder %s2478_s7, %s2474_s21  ;;  %p2482_p4 = scmp.lt.u32.totalorder %s2474_s21, %s1848_s16 }
 0x464   : > { %p2476_p12 = pnand %p2475_p11, %p2718_p3 }
 0x465   : > { %p2481_p2 = por %p2480_p1, %p2479_p0 }
 0x466   : > { %p2477_p13 = pneg %p2476_p12 }
 0x467   : > { %p2483_p6 = por %p2482_p4, %p2481_p2 }
 0x469   : > { %p2484_p5 = pnand %p2483_p6, %p2477_p13 }
 0x46b   : > { %2487 = shalt.err (!%p2484_p5)
}
 0x46c   : > { %2270 = dma.vmem_to_hbm [thread:$0]  (%p2718_p3), %s3304_s19, 16, %s1848_s16, %s1828_s14  }
 0x46d   : > { %s2092_s23 = sshll.u32 %s2574_s29, 4  ;;  %s1864_s25 = sshll.u32 %s2760_s12, 4  ;;  %s3329_s25 = int_to_ptr.vmem [resolvable:$true] %s1864_s25 }
 0x46e   : > { %s1861_s27 = sadd.s32 %s2570_s28, %s2092_s23  ;;  %s3425_s9 = sld [smem:[#allocation23_spill]] }
 0x46f   : > { %s2093_s13 = sshll.u32 %s1861_s27, 7  ;;  %s1832_s26 = scalar_lea.sflag [#allocation10], %s2739_s24 }
 0x470   : > { %s2488_s7 = scalar_lea.vmem %s3329_s25, 1024  ;;  %s2592_s29 = smov [#allocation9]  }
 0x471   : > { %p2489_p7 = scmp.ne.s32.totalorder %s3329_s25, %s2488_s7  ;;  %s2492_s12 = sshll.u32 %s2592_s29, 4  ;;  %s2493_s12 = int_to_ptr.vmem [resolvable:$false] %s2492_s12 }
 0x472   : > { %s2494_s28 = scalar_lea.vmem %s2493_s12, 2048  ;;  %p2495_p11 = scmp.lt.s32.totalorder %s3329_s25, %s2493_s12 }
 0x473   : > { %p2490_p9 = pnand %p2489_p7, %p2718_p3  ;;  %p2496_p12 = scmp.lt.s32.totalorder %s2494_s28, %s2488_s7 }
 0x474   : > { %s3426_s21 = smov %s3425_s9  ;;  %s3334_s22 = scalar_lea.hbm %s3425_s9, %s2093_s13 }
 0x475   : > { %p2491_p10 = pneg %p2490_p9  ;;  %p2497_p13 = por %p2496_p12, %p2495_p11 }
 0x477   : > { %p2498_p0 = pnand %p2497_p13, %p2491_p10 }
 0x479   : > { %2501 = shalt.err (!%p2498_p0)
}
 0x47a   : > { %s2502_s19 = scalar_lea.hbm %s3334_s22, 1024  ;;  %s2506_s30 = scalar_lea.hbm %s3426_s21, 4096 }
 0x47b   : > { %p2503_p1 = scmp.ne.s32.totalorder %s3334_s22, %s2502_s19  ;;  %p2507_p6 = scmp.lt.u32.totalorder %s3334_s22, %s3426_s21 }
 0x47c   : > { %p2508_p5 = scmp.lt.u32.totalorder %s2506_s30, %s2502_s19  ;;  %p2510_p9 = scmp.lt.u32.totalorder %s2502_s19, %s3334_s22 }
 0x47d   : > { %p2504_p2 = pnand %p2503_p1, %p2718_p3 }
 0x47e   : > { %p2509_p7 = por %p2508_p5, %p2507_p6 }
 0x47f   : > { %p2505_p4 = pneg %p2504_p2 }
 0x480   : > { %p2511_p10 = por %p2510_p9, %p2509_p7 }
 0x482   : > { %p2512_p11 = pnand %p2511_p10, %p2505_p4 }
 0x484   : > { %2515 = shalt.err (!%p2512_p11)
}
 0x485   : > { %s2593_s27 = smov 128   ;;  %s2594_s13 = smov 256  }
 0x486   : > { %s2595_s17 = smov 8  }
 0x487   : > { %2271 = dma.vmem_to_hbm [thread:$0]  (%p2718_p3), %s3329_s25, 1024, %s3334_s22, %s1832_s26, %s2593_s27, %s2594_s13, %s2595_s17  }
 0x488 PF: > { %s3427_s20 = sld [smem:[#allocation18_spill]]  ;;  %s3428_s9 = sld [smem:[#allocation13_spill]] }
 0x48e   : > { %p2281_p12 = scmp.ge.s32.totalorder %s3427_s20, 2  ;;  %s1885_s29 = sand.u32 1, %s3428_s9  }
 0x48f   : > { %s1886_s12 = scalar_lea.sflag [#allocation8], %s1885_s29 }
 0x490   : > { %p2275_p13 = pnand %p2281_p12, %p2727_p8 }
 0x492   : > { %2549 = dma.done.wait (!%p2275_p13), %s1886_s12, 16  }
 0x493   : > { %2551 = vsyncadd (!%p2275_p13), %s1886_s12, 4294967280  ;;  %s1894_s28 = scalar_lea.sflag [#allocation10], %s1885_s29 }
 0x494   : > { %2553 = dma.done.wait (!%p2275_p13), %s1894_s28, 1024  }
 0x495   : > { %2555 = vsyncadd (!%p2275_p13), %s1894_s28, 4294966272  ;;  %s33_s9 = sadd.s32 1, %s3427_s20   ;;  %s3430_s25 = sld [smem:[#allocation14_spill]] }
 0x496   : > { %p30_p0 = scmp.ge.s32.totalorder %s33_s9, 6   ;;  %s3431_s26 = sld [smem:[#allocation15_spill]] }
 0x497   : > { %s3432_s27 = sld [smem:[#allocation22_spill]]  ;;  %s3433_s28 = sld [smem:[#allocation16_spill]] }
 0x498   : > { %s3434_s29 = sld [smem:[#allocation17_spill]]  ;;  %s3435_s7 = sld [smem:[#allocation19_spill]] }
 0x499   : > { %s3436_s30 = sld [smem:[#allocation20_spill]]  ;;  %32 = sbr.rel (!%p30_p0) target bundleno = 10 (0xa), region = 135 }
 0x4a0   :  { %1899 = vsyncpa [#allocation8], 1 }
 0x4a1   :  { %1901 = vsyncpa [#allocation8 + $0x1], 1 }
 0x4a2   :  { %1902 = vsyncpa [#allocation10], 1 }
 0x4a3   :  { %1904 = vsyncpa [#allocation10 + $0x1], 1 }

</bundles_post_ra>
